<compile_context>
chip_gen: v5e
topology: v5e:2x2
jax: 0.10.0
libtpu: 0.0.40
codegen_flags: <defaults>
</compile_context>

<pallas_src>
import functools

import jax
import jax.numpy as jnp
from jax import lax
from jax.experimental import pallas as pl
from jax.experimental.pallas import tpu as pltpu

# ------------------------- model hyper-parameters (small) -------------------
NODE_CNT = 50       # vocabulary size of the (synthetic) word2vec embedding
EMBED = 16          # embedding_size
HIDDEN = 16         # gru_hidden_size (LSTM hidden, bidirectional -> 2*HIDDEN)
DENSE1 = 32         # dense1_hidden
DENSE2 = 16         # dense2_hidden
SEQ_L = 8           # walk_length  (nodes per sequence)
N_SEQ = 4           # number of sequences per cascade
BSZ = 2             # data batch size
SEQ_BATCH = 2       # sequence_batch_size (K of the K-attention / GeoWeight)
GEO_A = 0.5         # GeoWeight slope   (deterministic synthetic init)
GEO_C = 0.0         # GeoWeight offset  (deterministic synthetic init)
# activation == 'tanh' (the `else` branch of the PyTorch module)


# ============================ fused Pallas kernel ============================
def _deepcas_fused_kernel(x_ref, w_ref,
                          wih0_ref, whh0_ref, b0_ref,
                          wih1_ref, whh1_ref, b1_ref,
                          wd1_ref, bd1_ref, wd2_ref, bd2_ref,
                          wd3_ref, bd3_ref,
                          out_ref,
                          feat1_sc, feat2_sc,
                          *, seq_l, n_seq, bsz, hidden):
    """Whole DeepCas forward in one kernel.

    x_ref    : (T*B, E)   time-major flattened embedded input, B = n_seq*bsz
    w_ref    : (T*B, 2H)  precomputed step_weight*geo_weight per row
    wih{0,1} : (I, 8H)    packed input->gate weights (both directions, 128 lanes)
    whh{0,1} : (2H, 8H)   packed block-diagonal hidden->gate weights
    b{0,1}   : (1, 8H)    packed gate bias (b_ih + b_hh folded)
    wd*/bd*  : dense1/2/3 params (dense3 weight passed as a (1, D2) row)
    out_ref  : (bsz, 1)
    feat*_sc : (T*B, 2H)  VMEM scratch holding each layer's bidirectional output
    """
    T, B, H = seq_l, n_seq * bsz, hidden
    H2 = 2 * H
    G = 8 * H  # 128 packed gate lanes: [i_f,i_b, f_f,f_b, o_f,o_b, g_f,g_b]

    # Lane mask selecting the forward-direction half of every 2H gate block.
    lane = lax.broadcasted_iota(jnp.int32, (B, G), 1)
    fwd_mask = (lane % H2) < H

    def bi_lstm_layer(x_flat, wih, whh, bias, feat_ref):
        # Hoisted input projection: both directions + bias in ONE lane-dense matmul.
        proj = jnp.dot(x_flat, wih,
                       preferred_element_type=jnp.float32) + bias      # (T*B, G)
        h = jnp.zeros((B, H2), jnp.float32)                            # [h_fwd|h_bwd]
        c = jnp.zeros((B, H2), jnp.float32)
        for t in range(T):  # static trip count -> fully unrolled recurrence
            g_t = proj[t * B:(t + 1) * B, :]             # input gates @ time t      (fwd)
            g_r = proj[(T - 1 - t) * B:(T - t) * B, :]   # input gates @ time T-1-t  (bwd)
            gates = (jnp.where(fwd_mask, g_t, g_r)
                     + jnp.dot(h, whh, preferred_element_type=jnp.float32))
            sig = jax.nn.sigmoid(gates[:, :3 * H2])      # i|f|o (contiguous 96 lanes)
            g_g = jnp.tanh(gates[:, 3 * H2:])            # g     (last 32 lanes)
            i_g = sig[:, :H2]
            f_g = sig[:, H2:2 * H2]
            o_g = sig[:, 2 * H2:]
            c = f_g * c + i_g * g_g
            h = o_g * jnp.tanh(c)
            feat_ref[t * B:(t + 1) * B, :H] = h[:, :H]                 # fwd out @ t
            feat_ref[(T - 1 - t) * B:(T - t) * B, H:] = h[:, H:]       # bwd out @ T-1-t

    # ---- 2-layer bidirectional LSTM; intermediates stay in VMEM scratch ----
    bi_lstm_layer(x_ref[...], wih0_ref[...], whh0_ref[...], b0_ref[...], feat1_sc)
    bi_lstm_layer(feat1_sc[...], wih1_ref[...], whh1_ref[...], b1_ref[...], feat2_sc)

    # ---- weighted mean pool over (n_seq, seq_l) ----
    wfeat = feat2_sc[...] * w_ref[...]                   # (T*B, 2H)
    st = wfeat[0:B, :]
    for t in range(1, T):
        st = st + wfeat[t * B:(t + 1) * B, :]            # (B, 2H): summed over time
    pooled = st[0:bsz, :]
    for n in range(1, n_seq):
        pooled = pooled + st[n * bsz:(n + 1) * bsz, :]   # (bsz, 2H): summed over seqs
    pooled = pooled * (1.0 / float(n_seq * seq_l))

    # ---- MLP head (tanh activations) ----
    h1 = jnp.tanh(jnp.dot(pooled, wd1_ref[...],
                          preferred_element_type=jnp.float32) + bd1_ref[...])
    h2 = jnp.tanh(jnp.dot(h1, wd2_ref[...],
                          preferred_element_type=jnp.float32) + bd2_ref[...])
    # Final (D2 -> 1) layer as a lane reduction instead of a 1-column MXU matmul.
    out_ref[...] = jnp.tanh(jnp.sum(h2 * wd3_ref[...], axis=-1, keepdims=True)
                            + bd3_ref[...])


# ============================ glue / wrapper ================================
def geo_weights(cascade_sizes, n_seq):
    # TODO(synk): GeoWeight source not provided; assumed DeepCas K-attention:
    # p_b = sigmoid(a*log(size+1)+c); the j-th sequence mini-batch (size K)
    # gets weight p_b * (1-p_b)**j.
    p = jax.nn.sigmoid(GEO_A * jnp.log(cascade_sizes.astype(jnp.float32) + 1.0)
                       + GEO_C)                               # (bsz,)
    j = (jnp.arange(n_seq) // SEQ_BATCH).astype(jnp.float32)  # (n_seq,)
    return p[:, None] * (1.0 - p[:, None]) ** j[None, :]      # (bsz, n_seq)


def pack_bidir_layer(fwd, bwd):
    """Pack fwd/bwd LSTM params into gate-major, direction-minor layout with
    gate order (i, f, o, g) -> 8H = 128 gate lanes."""
    H = HIDDEN

    def reorder(w):  # columns (i,f,g,o) -> list [i, f, o, g]
        i_, f_, g_, o_ = jnp.split(w, 4, axis=-1)
        return [i_, f_, o_, g_]

    wif, whf, bf = fwd
    wib, whb, bb = bwd
    cif, cib = reorder(wif), reorder(wib)
    chf, chb = reorder(whf), reorder(whb)
    cbf, cbb = reorder(bf), reorder(bb)
    # columns: [i_f, i_b, f_f, f_b, o_f, o_b, g_f, g_b]
    wih = jnp.concatenate([x for pair in zip(cif, cib) for x in pair], axis=-1)
    b = jnp.concatenate([x for pair in zip(cbf, cbb) for x in pair], axis=-1)
    z = jnp.zeros((H, H), jnp.float32)
    top = jnp.concatenate([x for g in range(4) for x in (chf[g], z)], axis=-1)
    bot = jnp.concatenate([x for g in range(4) for x in (z, chb[g])], axis=-1)
    whh = jnp.concatenate([top, bot], axis=0)                 # (2H, 8H)
    return wih, whh, b


def deepcas_forward(params, x_vector, cascade_sizes):
    bsz, n_seq, seq_l = x_vector.shape
    # Embedding lookup + torch-matching permutes (glue).
    emb = jnp.take(params['embedding'], x_vector, axis=0)     # (b,n,t,E)
    x = jnp.transpose(emb, (1, 0, 2, 3)).reshape(n_seq * bsz, seq_l, EMBED)
    x = jnp.transpose(x, (1, 0, 2)).astype(jnp.float32)       # (T, B_all, E)
    x_flat = x.reshape(seq_l * n_seq * bsz, EMBED)            # (T*B, E)

    # Packed bidirectional LSTM parameters (128-lane gate layout).
    wih0, whh0, b0 = pack_bidir_layer(params['lstm'][0]['fwd'],
                                      params['lstm'][0]['bwd'])
    wih1, whh1, b1 = pack_bidir_layer(params['lstm'][1]['fwd'],
                                      params['lstm'][1]['bwd'])

    # TODO(synk): StepWeight source not provided; assumed learnable per-step
    # multiplicative weight of shape (seq_l,). Folded with GeoWeight into one
    # per-(t, seq, sample) weight outside the kernel.
    geo = geo_weights(cascade_sizes, n_seq)                   # (bsz, n_seq)
    comb = (params['step_weight'][:, None, None]              # (T, 1, 1)
            * jnp.transpose(geo)[None, :, :])                 # (T, n_seq, bsz)
    comb = jnp.broadcast_to(comb.reshape(seq_l, n_seq * bsz, 1),
                            (seq_l, n_seq * bsz, 2 * HIDDEN))
    comb = comb.reshape(seq_l * n_seq * bsz, 2 * HIDDEN)      # (T*B, 2H)

    kernel = functools.partial(_deepcas_fused_kernel, seq_l=seq_l,
                               n_seq=n_seq, bsz=bsz, hidden=HIDDEN)
    vmem = pl.BlockSpec(memory_space=pltpu.MemorySpace.VMEM)
    out = pl.pallas_call(
        kernel,
        out_shape=jax.ShapeDtypeStruct((bsz, 1), jnp.float32),
        in_specs=[vmem] * 14,
        out_specs=vmem,
        scratch_shapes=[
            pltpu.VMEM((seq_l * n_seq * bsz, 2 * HIDDEN), jnp.float32),
            pltpu.VMEM((seq_l * n_seq * bsz, 2 * HIDDEN), jnp.float32),
        ],
    )(x_flat, comb,
      wih0, whh0, b0, wih1, whh1, b1,
      params['w1'], params['b1'], params['w2'], params['b2'],
      jnp.reshape(params['w3'], (1, DENSE2)), params['b3'])
    return out


# ============================ pure-JAX reference ============================
def _ref_lstm_direction(x, w_ih, w_hh, b):
    T, B, _ = x.shape
    H = w_hh.shape[0]

    def step(carry, x_t):
        hh, cc = carry
        gates = x_t @ w_ih + hh @ w_hh + b
        i_g = jax.nn.sigmoid(gates[:, :H])
        f_g = jax.nn.sigmoid(gates[:, H:2 * H])
        g_g = jnp.tanh(gates[:, 2 * H:3 * H])
        o_g = jax.nn.sigmoid(gates[:, 3 * H:])
        cc = f_g * cc + i_g * g_g
        hh = o_g * jnp.tanh(cc)
        return (hh, cc), hh

    init = (jnp.zeros((B, H), jnp.float32), jnp.zeros((B, H), jnp.float32))
    _, hs = lax.scan(step, init, x)
    return hs


def reference_forward(params, x_vector, cascade_sizes):
    bsz, n_seq, seq_l = x_vector.shape
    emb = jnp.take(params['embedding'], x_vector, axis=0)
    x = jnp.transpose(emb, (1, 0, 2, 3)).reshape(n_seq * bsz, seq_l, EMBED)
    x = jnp.transpose(x, (1, 0, 2)).astype(jnp.float32)
    h = x
    for layer in range(2):
        fwd = _ref_lstm_direction(h, *params['lstm'][layer]['fwd'])
        bwd = _ref_lstm_direction(h[::-1], *params['lstm'][layer]['bwd'])[::-1]
        h = jnp.concatenate([fwd, bwd], axis=-1)
    feat = jnp.transpose(h.reshape(seq_l, n_seq, bsz, 2 * HIDDEN), (2, 1, 0, 3))
    step_w = params['step_weight'].reshape(1, 1, seq_l, 1)
    geo_w = geo_weights(cascade_sizes, n_seq).reshape(bsz, n_seq, 1, 1)
    pooled = jnp.sum(feat * step_w * geo_w, axis=(1, 2)) / (n_seq * seq_l)
    h1 = jnp.tanh(pooled @ params['w1'] + params['b1'])
    h2 = jnp.tanh(h1 @ params['w2'] + params['b2'])
    return jnp.tanh(h2 @ params['w3'] + params['b3'])


# ============================ deterministic init ============================
def init_params(key):
    def uni(k, shape, scale):
        return jax.random.uniform(k, shape, jnp.float32, -scale, scale)

    ks = iter(jax.random.split(key, 64))
    params = {}
    params['embedding'] = (jax.random.normal(next(ks), (NODE_CNT, EMBED),
                                             jnp.float32) * 0.1)
    s = HIDDEN ** -0.5
    lstm = []
    for layer in range(2):
        isz = EMBED if layer == 0 else 2 * HIDDEN
        layer_p = {}
        for d in ('fwd', 'bwd'):
            w_ih = uni(next(ks), (isz, 4 * HIDDEN), s)       # gate order i,f,g,o
            w_hh = uni(next(ks), (HIDDEN, 4 * HIDDEN), s)
            b = uni(next(ks), (1, 4 * HIDDEN), s)            # b_ih + b_hh folded
            layer_p[d] = (w_ih, w_hh, b)
        lstm.append(layer_p)
    params['lstm'] = lstm
    params['step_weight'] = 1.0 + uni(next(ks), (SEQ_L,), 0.5)
    params['w1'] = uni(next(ks), (2 * HIDDEN, DENSE1), (2 * HIDDEN) ** -0.5)
    params['b1'] = uni(next(ks), (1, DENSE1), (2 * HIDDEN) ** -0.5)
    params['w2'] = uni(next(ks), (DENSE1, DENSE2), DENSE1 ** -0.5)
    params['b2'] = uni(next(ks), (1, DENSE2), DENSE1 ** -0.5)
    params['w3'] = uni(next(ks), (DENSE2, 1), DENSE2 ** -0.5)
    params['b3'] = uni(next(ks), (1, 1), DENSE2 ** -0.5)
    return params


# ================================== main ====================================
if __name__ == "__main__":
    key = jax.random.PRNGKey(0)
    k_param, k_x, k_sz = jax.random.split(key, 3)
    params = init_params(k_param)

    x_vector = jax.random.randint(k_x, (BSZ, N_SEQ, SEQ_L), 0, NODE_CNT,
                                  dtype=jnp.int32)
    cascade_sizes = jax.random.randint(k_sz, (BSZ,), 1, 100, dtype=jnp.int32)

    out = deepcas_forward(params, x_vector, cascade_sizes)
    out = jax.block_until_ready(out)

    ref = reference_forward(params, x_vector, cascade_sizes)
    assert out.shape == (BSZ, 1), out.shape
    assert jnp.allclose(out, ref, atol=1e-3, rtol=1e-3), (out, ref)

    print("KERNEL_OK")
</pallas_src>

<mosaic_0001>
module attributes {stable_mosaic.version = 11 : i64} {
  func.func @_deepcas_fused_kernel(%arg0: memref<64x16xf32, #tpu.memory_space<vmem>>, %arg1: memref<64x32xf32, #tpu.memory_space<vmem>>, %arg2: memref<16x128xf32, #tpu.memory_space<vmem>>, %arg3: memref<32x128xf32, #tpu.memory_space<vmem>>, %arg4: memref<1x128xf32, #tpu.memory_space<vmem>>, %arg5: memref<32x128xf32, #tpu.memory_space<vmem>>, %arg6: memref<32x128xf32, #tpu.memory_space<vmem>>, %arg7: memref<1x128xf32, #tpu.memory_space<vmem>>, %arg8: memref<32x32xf32, #tpu.memory_space<vmem>>, %arg9: memref<1x32xf32, #tpu.memory_space<vmem>>, %arg10: memref<32x16xf32, #tpu.memory_space<vmem>>, %arg11: memref<1x16xf32, #tpu.memory_space<vmem>>, %arg12: memref<1x16xf32, #tpu.memory_space<vmem>>, %arg13: memref<1x1xf32, #tpu.memory_space<vmem>>, %arg14: memref<2x1xf32, #tpu.memory_space<vmem>>, %arg15: memref<64x32xf32, #tpu.memory_space<vmem>>, %arg16: memref<64x32xf32, #tpu.memory_space<vmem>>) attributes {dimension_semantics = [], scalar_prefetch = 0 : i64, scratch_operands = 2 : i64, tpu.core_type = #tpu.core_type<tc>} {
    %0 = tpu.iota {dimensions = array<i32: 1>} : vector<8x128xi32>
    %c32_i32 = arith.constant 32 : i32
    %c0_i32 = arith.constant 0 : i32
    %1 = arith.cmpi eq, %c32_i32, %c0_i32 : i32
    %c1_i32 = arith.constant 1 : i32
    %2 = arith.select %1, %c1_i32, %c32_i32 : i32
    %3 = vector.broadcast %2 : i32 to vector<8x128xi32>
    %4 = arith.remsi %0, %3 : vector<8x128xi32>
    %c0_i32_0 = arith.constant 0 : i32
    %5 = vector.broadcast %c0_i32_0 : i32 to vector<8x128xi32>
    %6 = arith.cmpi ne, %4, %5 : vector<8x128xi32>
    %c0_i32_1 = arith.constant 0 : i32
    %7 = vector.broadcast %c0_i32_1 : i32 to vector<8x128xi32>
    %8 = arith.cmpi slt, %4, %7 : vector<8x128xi32>
    %c0_i32_2 = arith.constant 0 : i32
    %9 = arith.cmpi slt, %2, %c0_i32_2 : i32
    %10 = vector.broadcast %9 : i1 to vector<8x128xi1>
    %11 = vector.broadcast %10 : vector<8x128xi1> to vector<8x128xi1>
    %12 = arith.xori %8, %11 : vector<8x128xi1>
    %13 = arith.andi %12, %6 : vector<8x128xi1>
    %14 = vector.broadcast %2 : i32 to vector<8x128xi32>
    %15 = arith.addi %4, %14 : vector<8x128xi32>
    %16 = arith.select %13, %15, %4 : vector<8x128xi1>, vector<8x128xi32>
    %c16_i32 = arith.constant 16 : i32
    %17 = vector.broadcast %c16_i32 : i32 to vector<8x128xi32>
    %18 = arith.cmpi slt, %16, %17 : vector<8x128xi32>
    %c0 = arith.constant 0 : index
    %c0_3 = arith.constant 0 : index
    %19 = vector.load %arg0[%c0, %c0_3] : memref<64x16xf32, #tpu.memory_space<vmem>>, vector<64x16xf32>
    %c0_4 = arith.constant 0 : index
    %c0_5 = arith.constant 0 : index
    %20 = vector.load %arg2[%c0_4, %c0_5] : memref<16x128xf32, #tpu.memory_space<vmem>>, vector<16x128xf32>
    %c0_6 = arith.constant 0 : index
    %c0_7 = arith.constant 0 : index
    %21 = vector.load %arg3[%c0_6, %c0_7] : memref<32x128xf32, #tpu.memory_space<vmem>>, vector<32x128xf32>
    %c0_8 = arith.constant 0 : index
    %c0_9 = arith.constant 0 : index
    %22 = vector.load %arg4[%c0_8, %c0_9] : memref<1x128xf32, #tpu.memory_space<vmem>>, vector<1x128xf32>
    %cst = arith.constant dense<0.000000e+00> : vector<64x128xf32>
    %23 = tpu.matmul %19, %20, %cst {dimension_numbers = #tpu.dot_dimension_numbers<[1], [0], [0], [1], [0, 0, 1, 1], [], []>} : vector<64x16xf32>, vector<16x128xf32>, vector<64x128xf32> -> vector<64x128xf32>
    %24 = vector.broadcast %22 : vector<1x128xf32> to vector<64x128xf32>
    %25 = arith.addf %23, %24 : vector<64x128xf32>
    %cst_10 = arith.constant 0.000000e+00 : f32
    %26 = vector.broadcast %cst_10 : f32 to vector<8x32xf32>
    %cst_11 = arith.constant 0.000000e+00 : f32
    %27 = vector.broadcast %cst_11 : f32 to vector<8x32xf32>
    %28 = vector.extract_strided_slice %25 {offsets = [0, 0], sizes = [8, 128], strides = [1, 1]} : vector<64x128xf32> to vector<8x128xf32>
    %29 = vector.extract_strided_slice %25 {offsets = [56, 0], sizes = [8, 128], strides = [1, 1]} : vector<64x128xf32> to vector<8x128xf32>
    %30 = arith.select %18, %28, %29 : vector<8x128xi1>, vector<8x128xf32>
    %cst_12 = arith.constant dense<0.000000e+00> : vector<8x128xf32>
    %31 = tpu.matmul %26, %21, %cst_12 {dimension_numbers = #tpu.dot_dimension_numbers<[1], [0], [0], [1], [0, 0, 1, 1], [], []>} : vector<8x32xf32>, vector<32x128xf32>, vector<8x128xf32> -> vector<8x128xf32>
    %32 = arith.addf %30, %31 : vector<8x128xf32>
    %33 = vector.extract_strided_slice %32 {offsets = [0, 0], sizes = [8, 96], strides = [1, 1]} : vector<8x128xf32> to vector<8x96xf32>
    %34 = arith.negf %33 : vector<8x96xf32>
    %35 = math.exp %34 : vector<8x96xf32>
    %cst_13 = arith.constant 1.000000e+00 : f32
    %36 = vector.broadcast %cst_13 : f32 to vector<8x96xf32>
    %37 = arith.addf %36, %35 : vector<8x96xf32>
    %38 = arith.divf %36, %37 : vector<8x96xf32>
    %39 = vector.extract_strided_slice %32 {offsets = [0, 96], sizes = [8, 32], strides = [1, 1]} : vector<8x128xf32> to vector<8x32xf32>
    %40 = math.tanh %39 : vector<8x32xf32>
    %41 = vector.extract_strided_slice %38 {offsets = [0, 0], sizes = [8, 32], strides = [1, 1]} : vector<8x96xf32> to vector<8x32xf32>
    %42 = vector.extract_strided_slice %38 {offsets = [0, 32], sizes = [8, 32], strides = [1, 1]} : vector<8x96xf32> to vector<8x32xf32>
    %43 = vector.extract_strided_slice %38 {offsets = [0, 64], sizes = [8, 32], strides = [1, 1]} : vector<8x96xf32> to vector<8x32xf32>
    %44 = arith.mulf %42, %27 : vector<8x32xf32>
    %45 = arith.mulf %41, %40 : vector<8x32xf32>
    %46 = arith.addf %44, %45 : vector<8x32xf32>
    %47 = math.tanh %46 : vector<8x32xf32>
    %48 = arith.mulf %43, %47 : vector<8x32xf32>
    %49 = vector.extract_strided_slice %48 {offsets = [0, 0], sizes = [8, 16], strides = [1, 1]} : vector<8x32xf32> to vector<8x16xf32>
    %c0_14 = arith.constant 0 : index
    %c0_15 = arith.constant 0 : index
    %50 = vector.load %arg15[%c0_14, %c0_15] : memref<64x32xf32, #tpu.memory_space<vmem>>, vector<8x16xf32>
    tpu.vector_store %arg15[%c0_14, %c0_15], %49 {strides = array<i32>} : memref<64x32xf32, #tpu.memory_space<vmem>>, vector<8x16xf32>,
    %51 = vector.extract_strided_slice %48 {offsets = [0, 16], sizes = [8, 16], strides = [1, 1]} : vector<8x32xf32> to vector<8x16xf32>
    %c56 = arith.constant 56 : index
    %c16 = arith.constant 16 : index
    %52 = vector.load %arg15[%c56, %c16] : memref<64x32xf32, #tpu.memory_space<vmem>>, vector<8x16xf32>
    tpu.vector_store %arg15[%c56, %c16], %51 {strides = array<i32>} : memref<64x32xf32, #tpu.memory_space<vmem>>, vector<8x16xf32>,
    %53 = vector.extract_strided_slice %25 {offsets = [8, 0], sizes = [8, 128], strides = [1, 1]} : vector<64x128xf32> to vector<8x128xf32>
    %54 = vector.extract_strided_slice %25 {offsets = [48, 0], sizes = [8, 128], strides = [1, 1]} : vector<64x128xf32> to vector<8x128xf32>
    %55 = arith.select %18, %53, %54 : vector<8x128xi1>, vector<8x128xf32>
    %cst_16 = arith.constant dense<0.000000e+00> : vector<8x128xf32>
    %56 = tpu.matmul %48, %21, %cst_16 {dimension_numbers = #tpu.dot_dimension_numbers<[1], [0], [0], [1], [0, 0, 1, 1], [], []>} : vector<8x32xf32>, vector<32x128xf32>, vector<8x128xf32> -> vector<8x128xf32>
    %57 = arith.addf %55, %56 : vector<8x128xf32>
    %58 = vector.extract_strided_slice %57 {offsets = [0, 0], sizes = [8, 96], strides = [1, 1]} : vector<8x128xf32> to vector<8x96xf32>
    %59 = arith.negf %58 : vector<8x96xf32>
    %60 = math.exp %59 : vector<8x96xf32>
    %cst_17 = arith.constant 1.000000e+00 : f32
    %61 = vector.broadcast %cst_17 : f32 to vector<8x96xf32>
    %62 = arith.addf %61, %60 : vector<8x96xf32>
    %63 = arith.divf %61, %62 : vector<8x96xf32>
    %64 = vector.extract_strided_slice %57 {offsets = [0, 96], sizes = [8, 32], strides = [1, 1]} : vector<8x128xf32> to vector<8x32xf32>
    %65 = math.tanh %64 : vector<8x32xf32>
    %66 = vector.extract_strided_slice %63 {offsets = [0, 0], sizes = [8, 32], strides = [1, 1]} : vector<8x96xf32> to vector<8x32xf32>
    %67 = vector.extract_strided_slice %63 {offsets = [0, 32], sizes = [8, 32], strides = [1, 1]} : vector<8x96xf32> to vector<8x32xf32>
    %68 = vector.extract_strided_slice %63 {offsets = [0, 64], sizes = [8, 32], strides = [1, 1]} : vector<8x96xf32> to vector<8x32xf32>
    %69 = arith.mulf %67, %46 : vector<8x32xf32>
    %70 = arith.mulf %66, %65 : vector<8x32xf32>
    %71 = arith.addf %69, %70 : vector<8x32xf32>
    %72 = math.tanh %71 : vector<8x32xf32>
    %73 = arith.mulf %68, %72 : vector<8x32xf32>
    %74 = vector.extract_strided_slice %73 {offsets = [0, 0], sizes = [8, 16], strides = [1, 1]} : vector<8x32xf32> to vector<8x16xf32>
    %c8 = arith.constant 8 : index
    %c0_18 = arith.constant 0 : index
    %75 = vector.load %arg15[%c8, %c0_18] : memref<64x32xf32, #tpu.memory_space<vmem>>, vector<8x16xf32>
    tpu.vector_store %arg15[%c8, %c0_18], %74 {strides = array<i32>} : memref<64x32xf32, #tpu.memory_space<vmem>>, vector<8x16xf32>,
    %76 = vector.extract_strided_slice %73 {offsets = [0, 16], sizes = [8, 16], strides = [1, 1]} : vector<8x32xf32> to vector<8x16xf32>
    %c48 = arith.constant 48 : index
    %c16_19 = arith.constant 16 : index
    %77 = vector.load %arg15[%c48, %c16_19] : memref<64x32xf32, #tpu.memory_space<vmem>>, vector<8x16xf32>
    tpu.vector_store %arg15[%c48, %c16_19], %76 {strides = array<i32>} : memref<64x32xf32, #tpu.memory_space<vmem>>, vector<8x16xf32>,
    %78 = vector.extract_strided_slice %25 {offsets = [16, 0], sizes = [8, 128], strides = [1, 1]} : vector<64x128xf32> to vector<8x128xf32>
    %79 = vector.extract_strided_slice %25 {offsets = [40, 0], sizes = [8, 128], strides = [1, 1]} : vector<64x128xf32> to vector<8x128xf32>
    %80 = arith.select %18, %78, %79 : vector<8x128xi1>, vector<8x128xf32>
    %cst_20 = arith.constant dense<0.000000e+00> : vector<8x128xf32>
    %81 = tpu.matmul %73, %21, %cst_20 {dimension_numbers = #tpu.dot_dimension_numbers<[1], [0], [0], [1], [0, 0, 1, 1], [], []>} : vector<8x32xf32>, vector<32x128xf32>, vector<8x128xf32> -> vector<8x128xf32>
    %82 = arith.addf %80, %81 : vector<8x128xf32>
    %83 = vector.extract_strided_slice %82 {offsets = [0, 0], sizes = [8, 96], strides = [1, 1]} : vector<8x128xf32> to vector<8x96xf32>
    %84 = arith.negf %83 : vector<8x96xf32>
    %85 = math.exp %84 : vector<8x96xf32>
    %cst_21 = arith.constant 1.000000e+00 : f32
    %86 = vector.broadcast %cst_21 : f32 to vector<8x96xf32>
    %87 = arith.addf %86, %85 : vector<8x96xf32>
    %88 = arith.divf %86, %87 : vector<8x96xf32>
    %89 = vector.extract_strided_slice %82 {offsets = [0, 96], sizes = [8, 32], strides = [1, 1]} : vector<8x128xf32> to vector<8x32xf32>
    %90 = math.tanh %89 : vector<8x32xf32>
    %91 = vector.extract_strided_slice %88 {offsets = [0, 0], sizes = [8, 32], strides = [1, 1]} : vector<8x96xf32> to vector<8x32xf32>
    %92 = vector.extract_strided_slice %88 {offsets = [0, 32], sizes = [8, 32], strides = [1, 1]} : vector<8x96xf32> to vector<8x32xf32>
    %93 = vector.extract_strided_slice %88 {offsets = [0, 64], sizes = [8, 32], strides = [1, 1]} : vector<8x96xf32> to vector<8x32xf32>
    %94 = arith.mulf %92, %71 : vector<8x32xf32>
    %95 = arith.mulf %91, %90 : vector<8x32xf32>
    %96 = arith.addf %94, %95 : vector<8x32xf32>
    %97 = math.tanh %96 : vector<8x32xf32>
    %98 = arith.mulf %93, %97 : vector<8x32xf32>
    %99 = vector.extract_strided_slice %98 {offsets = [0, 0], sizes = [8, 16], strides = [1, 1]} : vector<8x32xf32> to vector<8x16xf32>
    %c16_22 = arith.constant 16 : index
    %c0_23 = arith.constant 0 : index
    %100 = vector.load %arg15[%c16_22, %c0_23] : memref<64x32xf32, #tpu.memory_space<vmem>>, vector<8x16xf32>
    tpu.vector_store %arg15[%c16_22, %c0_23], %99 {strides = array<i32>} : memref<64x32xf32, #tpu.memory_space<vmem>>, vector<8x16xf32>,
    %101 = vector.extract_strided_slice %98 {offsets = [0, 16], sizes = [8, 16], strides = [1, 1]} : vector<8x32xf32> to vector<8x16xf32>
    %c40 = arith.constant 40 : index
    %c16_24 = arith.constant 16 : index
    %102 = vector.load %arg15[%c40, %c16_24] : memref<64x32xf32, #tpu.memory_space<vmem>>, vector<8x16xf32>
    tpu.vector_store %arg15[%c40, %c16_24], %101 {strides = array<i32>} : memref<64x32xf32, #tpu.memory_space<vmem>>, vector<8x16xf32>,
    %103 = vector.extract_strided_slice %25 {offsets = [24, 0], sizes = [8, 128], strides = [1, 1]} : vector<64x128xf32> to vector<8x128xf32>
    %104 = vector.extract_strided_slice %25 {offsets = [32, 0], sizes = [8, 128], strides = [1, 1]} : vector<64x128xf32> to vector<8x128xf32>
    %105 = arith.select %18, %103, %104 : vector<8x128xi1>, vector<8x128xf32>
    %cst_25 = arith.constant dense<0.000000e+00> : vector<8x128xf32>
    %106 = tpu.matmul %98, %21, %cst_25 {dimension_numbers = #tpu.dot_dimension_numbers<[1], [0], [0], [1], [0, 0, 1, 1], [], []>} : vector<8x32xf32>, vector<32x128xf32>, vector<8x128xf32> -> vector<8x128xf32>
    %107 = arith.addf %105, %106 : vector<8x128xf32>
    %108 = vector.extract_strided_slice %107 {offsets = [0, 0], sizes = [8, 96], strides = [1, 1]} : vector<8x128xf32> to vector<8x96xf32>
    %109 = arith.negf %108 : vector<8x96xf32>
    %110 = math.exp %109 : vector<8x96xf32>
    %cst_26 = arith.constant 1.000000e+00 : f32
    %111 = vector.broadcast %cst_26 : f32 to vector<8x96xf32>
    %112 = arith.addf %111, %110 : vector<8x96xf32>
    %113 = arith.divf %111, %112 : vector<8x96xf32>
    %114 = vector.extract_strided_slice %107 {offsets = [0, 96], sizes = [8, 32], strides = [1, 1]} : vector<8x128xf32> to vector<8x32xf32>
    %115 = math.tanh %114 : vector<8x32xf32>
    %116 = vector.extract_strided_slice %113 {offsets = [0, 0], sizes = [8, 32], strides = [1, 1]} : vector<8x96xf32> to vector<8x32xf32>
    %117 = vector.extract_strided_slice %113 {offsets = [0, 32], sizes = [8, 32], strides = [1, 1]} : vector<8x96xf32> to vector<8x32xf32>
    %118 = vector.extract_strided_slice %113 {offsets = [0, 64], sizes = [8, 32], strides = [1, 1]} : vector<8x96xf32> to vector<8x32xf32>
    %119 = arith.mulf %117, %96 : vector<8x32xf32>
    %120 = arith.mulf %116, %115 : vector<8x32xf32>
    %121 = arith.addf %119, %120 : vector<8x32xf32>
    %122 = math.tanh %121 : vector<8x32xf32>
    %123 = arith.mulf %118, %122 : vector<8x32xf32>
    %124 = vector.extract_strided_slice %123 {offsets = [0, 0], sizes = [8, 16], strides = [1, 1]} : vector<8x32xf32> to vector<8x16xf32>
    %c24 = arith.constant 24 : index
    %c0_27 = arith.constant 0 : index
    %125 = vector.load %arg15[%c24, %c0_27] : memref<64x32xf32, #tpu.memory_space<vmem>>, vector<8x16xf32>
    tpu.vector_store %arg15[%c24, %c0_27], %124 {strides = array<i32>} : memref<64x32xf32, #tpu.memory_space<vmem>>, vector<8x16xf32>,
    %126 = vector.extract_strided_slice %123 {offsets = [0, 16], sizes = [8, 16], strides = [1, 1]} : vector<8x32xf32> to vector<8x16xf32>
    %c32 = arith.constant 32 : index
    %c16_28 = arith.constant 16 : index
    %127 = vector.load %arg15[%c32, %c16_28] : memref<64x32xf32, #tpu.memory_space<vmem>>, vector<8x16xf32>
    tpu.vector_store %arg15[%c32, %c16_28], %126 {strides = array<i32>} : memref<64x32xf32, #tpu.memory_space<vmem>>, vector<8x16xf32>,
    %128 = vector.extract_strided_slice %25 {offsets = [32, 0], sizes = [8, 128], strides = [1, 1]} : vector<64x128xf32> to vector<8x128xf32>
    %129 = vector.extract_strided_slice %25 {offsets = [24, 0], sizes = [8, 128], strides = [1, 1]} : vector<64x128xf32> to vector<8x128xf32>
    %130 = arith.select %18, %128, %129 : vector<8x128xi1>, vector<8x128xf32>
    %cst_29 = arith.constant dense<0.000000e+00> : vector<8x128xf32>
    %131 = tpu.matmul %123, %21, %cst_29 {dimension_numbers = #tpu.dot_dimension_numbers<[1], [0], [0], [1], [0, 0, 1, 1], [], []>} : vector<8x32xf32>, vector<32x128xf32>, vector<8x128xf32> -> vector<8x128xf32>
    %132 = arith.addf %130, %131 : vector<8x128xf32>
    %133 = vector.extract_strided_slice %132 {offsets = [0, 0], sizes = [8, 96], strides = [1, 1]} : vector<8x128xf32> to vector<8x96xf32>
    %134 = arith.negf %133 : vector<8x96xf32>
    %135 = math.exp %134 : vector<8x96xf32>
    %cst_30 = arith.constant 1.000000e+00 : f32
    %136 = vector.broadcast %cst_30 : f32 to vector<8x96xf32>
    %137 = arith.addf %136, %135 : vector<8x96xf32>
    %138 = arith.divf %136, %137 : vector<8x96xf32>
    %139 = vector.extract_strided_slice %132 {offsets = [0, 96], sizes = [8, 32], strides = [1, 1]} : vector<8x128xf32> to vector<8x32xf32>
    %140 = math.tanh %139 : vector<8x32xf32>
    %141 = vector.extract_strided_slice %138 {offsets = [0, 0], sizes = [8, 32], strides = [1, 1]} : vector<8x96xf32> to vector<8x32xf32>
    %142 = vector.extract_strided_slice %138 {offsets = [0, 32], sizes = [8, 32], strides = [1, 1]} : vector<8x96xf32> to vector<8x32xf32>
    %143 = vector.extract_strided_slice %138 {offsets = [0, 64], sizes = [8, 32], strides = [1, 1]} : vector<8x96xf32> to vector<8x32xf32>
    %144 = arith.mulf %142, %121 : vector<8x32xf32>
    %145 = arith.mulf %141, %140 : vector<8x32xf32>
    %146 = arith.addf %144, %145 : vector<8x32xf32>
    %147 = math.tanh %146 : vector<8x32xf32>
    %148 = arith.mulf %143, %147 : vector<8x32xf32>
    %149 = vector.extract_strided_slice %148 {offsets = [0, 0], sizes = [8, 16], strides = [1, 1]} : vector<8x32xf32> to vector<8x16xf32>
    %c32_31 = arith.constant 32 : index
    %c0_32 = arith.constant 0 : index
    %150 = vector.load %arg15[%c32_31, %c0_32] : memref<64x32xf32, #tpu.memory_space<vmem>>, vector<8x16xf32>
    tpu.vector_store %arg15[%c32_31, %c0_32], %149 {strides = array<i32>} : memref<64x32xf32, #tpu.memory_space<vmem>>, vector<8x16xf32>,
    %151 = vector.extract_strided_slice %148 {offsets = [0, 16], sizes = [8, 16], strides = [1, 1]} : vector<8x32xf32> to vector<8x16xf32>
    %c24_33 = arith.constant 24 : index
    %c16_34 = arith.constant 16 : index
    %152 = vector.load %arg15[%c24_33, %c16_34] : memref<64x32xf32, #tpu.memory_space<vmem>>, vector<8x16xf32>
    tpu.vector_store %arg15[%c24_33, %c16_34], %151 {strides = array<i32>} : memref<64x32xf32, #tpu.memory_space<vmem>>, vector<8x16xf32>,
    %153 = vector.extract_strided_slice %25 {offsets = [40, 0], sizes = [8, 128], strides = [1, 1]} : vector<64x128xf32> to vector<8x128xf32>
    %154 = vector.extract_strided_slice %25 {offsets = [16, 0], sizes = [8, 128], strides = [1, 1]} : vector<64x128xf32> to vector<8x128xf32>
    %155 = arith.select %18, %153, %154 : vector<8x128xi1>, vector<8x128xf32>
    %cst_35 = arith.constant dense<0.000000e+00> : vector<8x128xf32>
    %156 = tpu.matmul %148, %21, %cst_35 {dimension_numbers = #tpu.dot_dimension_numbers<[1], [0], [0], [1], [0, 0, 1, 1], [], []>} : vector<8x32xf32>, vector<32x128xf32>, vector<8x128xf32> -> vector<8x128xf32>
    %157 = arith.addf %155, %156 : vector<8x128xf32>
    %158 = vector.extract_strided_slice %157 {offsets = [0, 0], sizes = [8, 96], strides = [1, 1]} : vector<8x128xf32> to vector<8x96xf32>
    %159 = arith.negf %158 : vector<8x96xf32>
    %160 = math.exp %159 : vector<8x96xf32>
    %cst_36 = arith.constant 1.000000e+00 : f32
    %161 = vector.broadcast %cst_36 : f32 to vector<8x96xf32>
    %162 = arith.addf %161, %160 : vector<8x96xf32>
    %163 = arith.divf %161, %162 : vector<8x96xf32>
    %164 = vector.extract_strided_slice %157 {offsets = [0, 96], sizes = [8, 32], strides = [1, 1]} : vector<8x128xf32> to vector<8x32xf32>
    %165 = math.tanh %164 : vector<8x32xf32>
    %166 = vector.extract_strided_slice %163 {offsets = [0, 0], sizes = [8, 32], strides = [1, 1]} : vector<8x96xf32> to vector<8x32xf32>
    %167 = vector.extract_strided_slice %163 {offsets = [0, 32], sizes = [8, 32], strides = [1, 1]} : vector<8x96xf32> to vector<8x32xf32>
    %168 = vector.extract_strided_slice %163 {offsets = [0, 64], sizes = [8, 32], strides = [1, 1]} : vector<8x96xf32> to vector<8x32xf32>
    %169 = arith.mulf %167, %146 : vector<8x32xf32>
    %170 = arith.mulf %166, %165 : vector<8x32xf32>
    %171 = arith.addf %169, %170 : vector<8x32xf32>
    %172 = math.tanh %171 : vector<8x32xf32>
    %173 = arith.mulf %168, %172 : vector<8x32xf32>
    %174 = vector.extract_strided_slice %173 {offsets = [0, 0], sizes = [8, 16], strides = [1, 1]} : vector<8x32xf32> to vector<8x16xf32>
    %c40_37 = arith.constant 40 : index
    %c0_38 = arith.constant 0 : index
    %175 = vector.load %arg15[%c40_37, %c0_38] : memref<64x32xf32, #tpu.memory_space<vmem>>, vector<8x16xf32>
    tpu.vector_store %arg15[%c40_37, %c0_38], %174 {strides = array<i32>} : memref<64x32xf32, #tpu.memory_space<vmem>>, vector<8x16xf32>,
    %176 = vector.extract_strided_slice %173 {offsets = [0, 16], sizes = [8, 16], strides = [1, 1]} : vector<8x32xf32> to vector<8x16xf32>
    %c16_39 = arith.constant 16 : index
    %c16_40 = arith.constant 16 : index
    %177 = vector.load %arg15[%c16_39, %c16_40] : memref<64x32xf32, #tpu.memory_space<vmem>>, vector<8x16xf32>
    tpu.vector_store %arg15[%c16_39, %c16_40], %176 {strides = array<i32>} : memref<64x32xf32, #tpu.memory_space<vmem>>, vector<8x16xf32>,
    %178 = vector.extract_strided_slice %25 {offsets = [48, 0], sizes = [8, 128], strides = [1, 1]} : vector<64x128xf32> to vector<8x128xf32>
    %179 = vector.extract_strided_slice %25 {offsets = [8, 0], sizes = [8, 128], strides = [1, 1]} : vector<64x128xf32> to vector<8x128xf32>
    %180 = arith.select %18, %178, %179 : vector<8x128xi1>, vector<8x128xf32>
    %cst_41 = arith.constant dense<0.000000e+00> : vector<8x128xf32>
    %181 = tpu.matmul %173, %21, %cst_41 {dimension_numbers = #tpu.dot_dimension_numbers<[1], [0], [0], [1], [0, 0, 1, 1], [], []>} : vector<8x32xf32>, vector<32x128xf32>, vector<8x128xf32> -> vector<8x128xf32>
    %182 = arith.addf %180, %181 : vector<8x128xf32>
    %183 = vector.extract_strided_slice %182 {offsets = [0, 0], sizes = [8, 96], strides = [1, 1]} : vector<8x128xf32> to vector<8x96xf32>
    %184 = arith.negf %183 : vector<8x96xf32>
    %185 = math.exp %184 : vector<8x96xf32>
    %cst_42 = arith.constant 1.000000e+00 : f32
    %186 = vector.broadcast %cst_42 : f32 to vector<8x96xf32>
    %187 = arith.addf %186, %185 : vector<8x96xf32>
    %188 = arith.divf %186, %187 : vector<8x96xf32>
    %189 = vector.extract_strided_slice %182 {offsets = [0, 96], sizes = [8, 32], strides = [1, 1]} : vector<8x128xf32> to vector<8x32xf32>
    %190 = math.tanh %189 : vector<8x32xf32>
    %191 = vector.extract_strided_slice %188 {offsets = [0, 0], sizes = [8, 32], strides = [1, 1]} : vector<8x96xf32> to vector<8x32xf32>
    %192 = vector.extract_strided_slice %188 {offsets = [0, 32], sizes = [8, 32], strides = [1, 1]} : vector<8x96xf32> to vector<8x32xf32>
    %193 = vector.extract_strided_slice %188 {offsets = [0, 64], sizes = [8, 32], strides = [1, 1]} : vector<8x96xf32> to vector<8x32xf32>
    %194 = arith.mulf %192, %171 : vector<8x32xf32>
    %195 = arith.mulf %191, %190 : vector<8x32xf32>
    %196 = arith.addf %194, %195 : vector<8x32xf32>
    %197 = math.tanh %196 : vector<8x32xf32>
    %198 = arith.mulf %193, %197 : vector<8x32xf32>
    %199 = vector.extract_strided_slice %198 {offsets = [0, 0], sizes = [8, 16], strides = [1, 1]} : vector<8x32xf32> to vector<8x16xf32>
    %c48_43 = arith.constant 48 : index
    %c0_44 = arith.constant 0 : index
    %200 = vector.load %arg15[%c48_43, %c0_44] : memref<64x32xf32, #tpu.memory_space<vmem>>, vector<8x16xf32>
    tpu.vector_store %arg15[%c48_43, %c0_44], %199 {strides = array<i32>} : memref<64x32xf32, #tpu.memory_space<vmem>>, vector<8x16xf32>,
    %201 = vector.extract_strided_slice %198 {offsets = [0, 16], sizes = [8, 16], strides = [1, 1]} : vector<8x32xf32> to vector<8x16xf32>
    %c8_45 = arith.constant 8 : index
    %c16_46 = arith.constant 16 : index
    %202 = vector.load %arg15[%c8_45, %c16_46] : memref<64x32xf32, #tpu.memory_space<vmem>>, vector<8x16xf32>
    tpu.vector_store %arg15[%c8_45, %c16_46], %201 {strides = array<i32>} : memref<64x32xf32, #tpu.memory_space<vmem>>, vector<8x16xf32>,
    %203 = vector.extract_strided_slice %25 {offsets = [56, 0], sizes = [8, 128], strides = [1, 1]} : vector<64x128xf32> to vector<8x128xf32>
    %204 = vector.extract_strided_slice %25 {offsets = [0, 0], sizes = [8, 128], strides = [1, 1]} : vector<64x128xf32> to vector<8x128xf32>
    %205 = arith.select %18, %203, %204 : vector<8x128xi1>, vector<8x128xf32>
    %cst_47 = arith.constant dense<0.000000e+00> : vector<8x128xf32>
    %206 = tpu.matmul %198, %21, %cst_47 {dimension_numbers = #tpu.dot_dimension_numbers<[1], [0], [0], [1], [0, 0, 1, 1], [], []>} : vector<8x32xf32>, vector<32x128xf32>, vector<8x128xf32> -> vector<8x128xf32>
    %207 = arith.addf %205, %206 : vector<8x128xf32>
    %208 = vector.extract_strided_slice %207 {offsets = [0, 0], sizes = [8, 96], strides = [1, 1]} : vector<8x128xf32> to vector<8x96xf32>
    %209 = arith.negf %208 : vector<8x96xf32>
    %210 = math.exp %209 : vector<8x96xf32>
    %cst_48 = arith.constant 1.000000e+00 : f32
    %211 = vector.broadcast %cst_48 : f32 to vector<8x96xf32>
    %212 = arith.addf %211, %210 : vector<8x96xf32>
    %213 = arith.divf %211, %212 : vector<8x96xf32>
    %214 = vector.extract_strided_slice %207 {offsets = [0, 96], sizes = [8, 32], strides = [1, 1]} : vector<8x128xf32> to vector<8x32xf32>
    %215 = math.tanh %214 : vector<8x32xf32>
    %216 = vector.extract_strided_slice %213 {offsets = [0, 0], sizes = [8, 32], strides = [1, 1]} : vector<8x96xf32> to vector<8x32xf32>
    %217 = vector.extract_strided_slice %213 {offsets = [0, 32], sizes = [8, 32], strides = [1, 1]} : vector<8x96xf32> to vector<8x32xf32>
    %218 = vector.extract_strided_slice %213 {offsets = [0, 64], sizes = [8, 32], strides = [1, 1]} : vector<8x96xf32> to vector<8x32xf32>
    %219 = arith.mulf %217, %196 : vector<8x32xf32>
    %220 = arith.mulf %216, %215 : vector<8x32xf32>
    %221 = arith.addf %219, %220 : vector<8x32xf32>
    %222 = math.tanh %221 : vector<8x32xf32>
    %223 = arith.mulf %218, %222 : vector<8x32xf32>
    %224 = vector.extract_strided_slice %223 {offsets = [0, 0], sizes = [8, 16], strides = [1, 1]} : vector<8x32xf32> to vector<8x16xf32>
    %c56_49 = arith.constant 56 : index
    %c0_50 = arith.constant 0 : index
    %225 = vector.load %arg15[%c56_49, %c0_50] : memref<64x32xf32, #tpu.memory_space<vmem>>, vector<8x16xf32>
    tpu.vector_store %arg15[%c56_49, %c0_50], %224 {strides = array<i32>} : memref<64x32xf32, #tpu.memory_space<vmem>>, vector<8x16xf32>,
    %226 = vector.extract_strided_slice %223 {offsets = [0, 16], sizes = [8, 16], strides = [1, 1]} : vector<8x32xf32> to vector<8x16xf32>
    %c0_51 = arith.constant 0 : index
    %c16_52 = arith.constant 16 : index
    %227 = vector.load %arg15[%c0_51, %c16_52] : memref<64x32xf32, #tpu.memory_space<vmem>>, vector<8x16xf32>
    tpu.vector_store %arg15[%c0_51, %c16_52], %226 {strides = array<i32>} : memref<64x32xf32, #tpu.memory_space<vmem>>, vector<8x16xf32>,
    %c0_53 = arith.constant 0 : index
    %c0_54 = arith.constant 0 : index
    %228 = vector.load %arg15[%c0_53, %c0_54] : memref<64x32xf32, #tpu.memory_space<vmem>>, vector<64x32xf32>
    %c0_55 = arith.constant 0 : index
    %c0_56 = arith.constant 0 : index
    %229 = vector.load %arg5[%c0_55, %c0_56] : memref<32x128xf32, #tpu.memory_space<vmem>>, vector<32x128xf32>
    %c0_57 = arith.constant 0 : index
    %c0_58 = arith.constant 0 : index
    %230 = vector.load %arg6[%c0_57, %c0_58] : memref<32x128xf32, #tpu.memory_space<vmem>>, vector<32x128xf32>
    %c0_59 = arith.constant 0 : index
    %c0_60 = arith.constant 0 : index
    %231 = vector.load %arg7[%c0_59, %c0_60] : memref<1x128xf32, #tpu.memory_space<vmem>>, vector<1x128xf32>
    %cst_61 = arith.constant dense<0.000000e+00> : vector<64x128xf32>
    %232 = tpu.matmul %228, %229, %cst_61 {dimension_numbers = #tpu.dot_dimension_numbers<[1], [0], [0], [1], [0, 0, 1, 1], [], []>} : vector<64x32xf32>, vector<32x128xf32>, vector<64x128xf32> -> vector<64x128xf32>
    %233 = vector.broadcast %231 : vector<1x128xf32> to vector<64x128xf32>
    %234 = arith.addf %232, %233 : vector<64x128xf32>
    %cst_62 = arith.constant 0.000000e+00 : f32
    %235 = vector.broadcast %cst_62 : f32 to vector<8x32xf32>
    %cst_63 = arith.constant 0.000000e+00 : f32
    %236 = vector.broadcast %cst_63 : f32 to vector<8x32xf32>
    %237 = vector.extract_strided_slice %234 {offsets = [0, 0], sizes = [8, 128], strides = [1, 1]} : vector<64x128xf32> to vector<8x128xf32>
    %238 = vector.extract_strided_slice %234 {offsets = [56, 0], sizes = [8, 128], strides = [1, 1]} : vector<64x128xf32> to vector<8x128xf32>
    %239 = arith.select %18, %237, %238 : vector<8x128xi1>, vector<8x128xf32>
    %cst_64 = arith.constant dense<0.000000e+00> : vector<8x128xf32>
    %240 = tpu.matmul %235, %230, %cst_64 {dimension_numbers = #tpu.dot_dimension_numbers<[1], [0], [0], [1], [0, 0, 1, 1], [], []>} : vector<8x32xf32>, vector<32x128xf32>, vector<8x128xf32> -> vector<8x128xf32>
    %241 = arith.addf %239, %240 : vector<8x128xf32>
    %242 = vector.extract_strided_slice %241 {offsets = [0, 0], sizes = [8, 96], strides = [1, 1]} : vector<8x128xf32> to vector<8x96xf32>
    %243 = arith.negf %242 : vector<8x96xf32>
    %244 = math.exp %243 : vector<8x96xf32>
    %cst_65 = arith.constant 1.000000e+00 : f32
    %245 = vector.broadcast %cst_65 : f32 to vector<8x96xf32>
    %246 = arith.addf %245, %244 : vector<8x96xf32>
    %247 = arith.divf %245, %246 : vector<8x96xf32>
    %248 = vector.extract_strided_slice %241 {offsets = [0, 96], sizes = [8, 32], strides = [1, 1]} : vector<8x128xf32> to vector<8x32xf32>
    %249 = math.tanh %248 : vector<8x32xf32>
    %250 = vector.extract_strided_slice %247 {offsets = [0, 0], sizes = [8, 32], strides = [1, 1]} : vector<8x96xf32> to vector<8x32xf32>
    %251 = vector.extract_strided_slice %247 {offsets = [0, 32], sizes = [8, 32], strides = [1, 1]} : vector<8x96xf32> to vector<8x32xf32>
    %252 = vector.extract_strided_slice %247 {offsets = [0, 64], sizes = [8, 32], strides = [1, 1]} : vector<8x96xf32> to vector<8x32xf32>
    %253 = arith.mulf %251, %236 : vector<8x32xf32>
    %254 = arith.mulf %250, %249 : vector<8x32xf32>
    %255 = arith.addf %253, %254 : vector<8x32xf32>
    %256 = math.tanh %255 : vector<8x32xf32>
    %257 = arith.mulf %252, %256 : vector<8x32xf32>
    %258 = vector.extract_strided_slice %257 {offsets = [0, 0], sizes = [8, 16], strides = [1, 1]} : vector<8x32xf32> to vector<8x16xf32>
    %c0_66 = arith.constant 0 : index
    %c0_67 = arith.constant 0 : index
    %259 = vector.load %arg16[%c0_66, %c0_67] : memref<64x32xf32, #tpu.memory_space<vmem>>, vector<8x16xf32>
    tpu.vector_store %arg16[%c0_66, %c0_67], %258 {strides = array<i32>} : memref<64x32xf32, #tpu.memory_space<vmem>>, vector<8x16xf32>,
    %260 = vector.extract_strided_slice %257 {offsets = [0, 16], sizes = [8, 16], strides = [1, 1]} : vector<8x32xf32> to vector<8x16xf32>
    %c56_68 = arith.constant 56 : index
    %c16_69 = arith.constant 16 : index
    %261 = vector.load %arg16[%c56_68, %c16_69] : memref<64x32xf32, #tpu.memory_space<vmem>>, vector<8x16xf32>
    tpu.vector_store %arg16[%c56_68, %c16_69], %260 {strides = array<i32>} : memref<64x32xf32, #tpu.memory_space<vmem>>, vector<8x16xf32>,
    %262 = vector.extract_strided_slice %234 {offsets = [8, 0], sizes = [8, 128], strides = [1, 1]} : vector<64x128xf32> to vector<8x128xf32>
    %263 = vector.extract_strided_slice %234 {offsets = [48, 0], sizes = [8, 128], strides = [1, 1]} : vector<64x128xf32> to vector<8x128xf32>
    %264 = arith.select %18, %262, %263 : vector<8x128xi1>, vector<8x128xf32>
    %cst_70 = arith.constant dense<0.000000e+00> : vector<8x128xf32>
    %265 = tpu.matmul %257, %230, %cst_70 {dimension_numbers = #tpu.dot_dimension_numbers<[1], [0], [0], [1], [0, 0, 1, 1], [], []>} : vector<8x32xf32>, vector<32x128xf32>, vector<8x128xf32> -> vector<8x128xf32>
    %266 = arith.addf %264, %265 : vector<8x128xf32>
    %267 = vector.extract_strided_slice %266 {offsets = [0, 0], sizes = [8, 96], strides = [1, 1]} : vector<8x128xf32> to vector<8x96xf32>
    %268 = arith.negf %267 : vector<8x96xf32>
    %269 = math.exp %268 : vector<8x96xf32>
    %cst_71 = arith.constant 1.000000e+00 : f32
    %270 = vector.broadcast %cst_71 : f32 to vector<8x96xf32>
    %271 = arith.addf %270, %269 : vector<8x96xf32>
    %272 = arith.divf %270, %271 : vector<8x96xf32>
    %273 = vector.extract_strided_slice %266 {offsets = [0, 96], sizes = [8, 32], strides = [1, 1]} : vector<8x128xf32> to vector<8x32xf32>
    %274 = math.tanh %273 : vector<8x32xf32>
    %275 = vector.extract_strided_slice %272 {offsets = [0, 0], sizes = [8, 32], strides = [1, 1]} : vector<8x96xf32> to vector<8x32xf32>
    %276 = vector.extract_strided_slice %272 {offsets = [0, 32], sizes = [8, 32], strides = [1, 1]} : vector<8x96xf32> to vector<8x32xf32>
    %277 = vector.extract_strided_slice %272 {offsets = [0, 64], sizes = [8, 32], strides = [1, 1]} : vector<8x96xf32> to vector<8x32xf32>
    %278 = arith.mulf %276, %255 : vector<8x32xf32>
    %279 = arith.mulf %275, %274 : vector<8x32xf32>
    %280 = arith.addf %278, %279 : vector<8x32xf32>
    %281 = math.tanh %280 : vector<8x32xf32>
    %282 = arith.mulf %277, %281 : vector<8x32xf32>
    %283 = vector.extract_strided_slice %282 {offsets = [0, 0], sizes = [8, 16], strides = [1, 1]} : vector<8x32xf32> to vector<8x16xf32>
    %c8_72 = arith.constant 8 : index
    %c0_73 = arith.constant 0 : index
    %284 = vector.load %arg16[%c8_72, %c0_73] : memref<64x32xf32, #tpu.memory_space<vmem>>, vector<8x16xf32>
    tpu.vector_store %arg16[%c8_72, %c0_73], %283 {strides = array<i32>} : memref<64x32xf32, #tpu.memory_space<vmem>>, vector<8x16xf32>,
    %285 = vector.extract_strided_slice %282 {offsets = [0, 16], sizes = [8, 16], strides = [1, 1]} : vector<8x32xf32> to vector<8x16xf32>
    %c48_74 = arith.constant 48 : index
    %c16_75 = arith.constant 16 : index
    %286 = vector.load %arg16[%c48_74, %c16_75] : memref<64x32xf32, #tpu.memory_space<vmem>>, vector<8x16xf32>
    tpu.vector_store %arg16[%c48_74, %c16_75], %285 {strides = array<i32>} : memref<64x32xf32, #tpu.memory_space<vmem>>, vector<8x16xf32>,
    %287 = vector.extract_strided_slice %234 {offsets = [16, 0], sizes = [8, 128], strides = [1, 1]} : vector<64x128xf32> to vector<8x128xf32>
    %288 = vector.extract_strided_slice %234 {offsets = [40, 0], sizes = [8, 128], strides = [1, 1]} : vector<64x128xf32> to vector<8x128xf32>
    %289 = arith.select %18, %287, %288 : vector<8x128xi1>, vector<8x128xf32>
    %cst_76 = arith.constant dense<0.000000e+00> : vector<8x128xf32>
    %290 = tpu.matmul %282, %230, %cst_76 {dimension_numbers = #tpu.dot_dimension_numbers<[1], [0], [0], [1], [0, 0, 1, 1], [], []>} : vector<8x32xf32>, vector<32x128xf32>, vector<8x128xf32> -> vector<8x128xf32>
    %291 = arith.addf %289, %290 : vector<8x128xf32>
    %292 = vector.extract_strided_slice %291 {offsets = [0, 0], sizes = [8, 96], strides = [1, 1]} : vector<8x128xf32> to vector<8x96xf32>
    %293 = arith.negf %292 : vector<8x96xf32>
    %294 = math.exp %293 : vector<8x96xf32>
    %cst_77 = arith.constant 1.000000e+00 : f32
    %295 = vector.broadcast %cst_77 : f32 to vector<8x96xf32>
    %296 = arith.addf %295, %294 : vector<8x96xf32>
    %297 = arith.divf %295, %296 : vector<8x96xf32>
    %298 = vector.extract_strided_slice %291 {offsets = [0, 96], sizes = [8, 32], strides = [1, 1]} : vector<8x128xf32> to vector<8x32xf32>
    %299 = math.tanh %298 : vector<8x32xf32>
    %300 = vector.extract_strided_slice %297 {offsets = [0, 0], sizes = [8, 32], strides = [1, 1]} : vector<8x96xf32> to vector<8x32xf32>
    %301 = vector.extract_strided_slice %297 {offsets = [0, 32], sizes = [8, 32], strides = [1, 1]} : vector<8x96xf32> to vector<8x32xf32>
    %302 = vector.extract_strided_slice %297 {offsets = [0, 64], sizes = [8, 32], strides = [1, 1]} : vector<8x96xf32> to vector<8x32xf32>
    %303 = arith.mulf %301, %280 : vector<8x32xf32>
    %304 = arith.mulf %300, %299 : vector<8x32xf32>
    %305 = arith.addf %303, %304 : vector<8x32xf32>
    %306 = math.tanh %305 : vector<8x32xf32>
    %307 = arith.mulf %302, %306 : vector<8x32xf32>
    %308 = vector.extract_strided_slice %307 {offsets = [0, 0], sizes = [8, 16], strides = [1, 1]} : vector<8x32xf32> to vector<8x16xf32>
    %c16_78 = arith.constant 16 : index
    %c0_79 = arith.constant 0 : index
    %309 = vector.load %arg16[%c16_78, %c0_79] : memref<64x32xf32, #tpu.memory_space<vmem>>, vector<8x16xf32>
    tpu.vector_store %arg16[%c16_78, %c0_79], %308 {strides = array<i32>} : memref<64x32xf32, #tpu.memory_space<vmem>>, vector<8x16xf32>,
    %310 = vector.extract_strided_slice %307 {offsets = [0, 16], sizes = [8, 16], strides = [1, 1]} : vector<8x32xf32> to vector<8x16xf32>
    %c40_80 = arith.constant 40 : index
    %c16_81 = arith.constant 16 : index
    %311 = vector.load %arg16[%c40_80, %c16_81] : memref<64x32xf32, #tpu.memory_space<vmem>>, vector<8x16xf32>
    tpu.vector_store %arg16[%c40_80, %c16_81], %310 {strides = array<i32>} : memref<64x32xf32, #tpu.memory_space<vmem>>, vector<8x16xf32>,
    %312 = vector.extract_strided_slice %234 {offsets = [24, 0], sizes = [8, 128], strides = [1, 1]} : vector<64x128xf32> to vector<8x128xf32>
    %313 = vector.extract_strided_slice %234 {offsets = [32, 0], sizes = [8, 128], strides = [1, 1]} : vector<64x128xf32> to vector<8x128xf32>
    %314 = arith.select %18, %312, %313 : vector<8x128xi1>, vector<8x128xf32>
    %cst_82 = arith.constant dense<0.000000e+00> : vector<8x128xf32>
    %315 = tpu.matmul %307, %230, %cst_82 {dimension_numbers = #tpu.dot_dimension_numbers<[1], [0], [0], [1], [0, 0, 1, 1], [], []>} : vector<8x32xf32>, vector<32x128xf32>, vector<8x128xf32> -> vector<8x128xf32>
    %316 = arith.addf %314, %315 : vector<8x128xf32>
    %317 = vector.extract_strided_slice %316 {offsets = [0, 0], sizes = [8, 96], strides = [1, 1]} : vector<8x128xf32> to vector<8x96xf32>
    %318 = arith.negf %317 : vector<8x96xf32>
    %319 = math.exp %318 : vector<8x96xf32>
    %cst_83 = arith.constant 1.000000e+00 : f32
    %320 = vector.broadcast %cst_83 : f32 to vector<8x96xf32>
    %321 = arith.addf %320, %319 : vector<8x96xf32>
    %322 = arith.divf %320, %321 : vector<8x96xf32>
    %323 = vector.extract_strided_slice %316 {offsets = [0, 96], sizes = [8, 32], strides = [1, 1]} : vector<8x128xf32> to vector<8x32xf32>
    %324 = math.tanh %323 : vector<8x32xf32>
    %325 = vector.extract_strided_slice %322 {offsets = [0, 0], sizes = [8, 32], strides = [1, 1]} : vector<8x96xf32> to vector<8x32xf32>
    %326 = vector.extract_strided_slice %322 {offsets = [0, 32], sizes = [8, 32], strides = [1, 1]} : vector<8x96xf32> to vector<8x32xf32>
    %327 = vector.extract_strided_slice %322 {offsets = [0, 64], sizes = [8, 32], strides = [1, 1]} : vector<8x96xf32> to vector<8x32xf32>
    %328 = arith.mulf %326, %305 : vector<8x32xf32>
    %329 = arith.mulf %325, %324 : vector<8x32xf32>
    %330 = arith.addf %328, %329 : vector<8x32xf32>
    %331 = math.tanh %330 : vector<8x32xf32>
    %332 = arith.mulf %327, %331 : vector<8x32xf32>
    %333 = vector.extract_strided_slice %332 {offsets = [0, 0], sizes = [8, 16], strides = [1, 1]} : vector<8x32xf32> to vector<8x16xf32>
    %c24_84 = arith.constant 24 : index
    %c0_85 = arith.constant 0 : index
    %334 = vector.load %arg16[%c24_84, %c0_85] : memref<64x32xf32, #tpu.memory_space<vmem>>, vector<8x16xf32>
    tpu.vector_store %arg16[%c24_84, %c0_85], %333 {strides = array<i32>} : memref<64x32xf32, #tpu.memory_space<vmem>>, vector<8x16xf32>,
    %335 = vector.extract_strided_slice %332 {offsets = [0, 16], sizes = [8, 16], strides = [1, 1]} : vector<8x32xf32> to vector<8x16xf32>
    %c32_86 = arith.constant 32 : index
    %c16_87 = arith.constant 16 : index
    %336 = vector.load %arg16[%c32_86, %c16_87] : memref<64x32xf32, #tpu.memory_space<vmem>>, vector<8x16xf32>
    tpu.vector_store %arg16[%c32_86, %c16_87], %335 {strides = array<i32>} : memref<64x32xf32, #tpu.memory_space<vmem>>, vector<8x16xf32>,
    %337 = vector.extract_strided_slice %234 {offsets = [32, 0], sizes = [8, 128], strides = [1, 1]} : vector<64x128xf32> to vector<8x128xf32>
    %338 = vector.extract_strided_slice %234 {offsets = [24, 0], sizes = [8, 128], strides = [1, 1]} : vector<64x128xf32> to vector<8x128xf32>
    %339 = arith.select %18, %337, %338 : vector<8x128xi1>, vector<8x128xf32>
    %cst_88 = arith.constant dense<0.000000e+00> : vector<8x128xf32>
    %340 = tpu.matmul %332, %230, %cst_88 {dimension_numbers = #tpu.dot_dimension_numbers<[1], [0], [0], [1], [0, 0, 1, 1], [], []>} : vector<8x32xf32>, vector<32x128xf32>, vector<8x128xf32> -> vector<8x128xf32>
    %341 = arith.addf %339, %340 : vector<8x128xf32>
    %342 = vector.extract_strided_slice %341 {offsets = [0, 0], sizes = [8, 96], strides = [1, 1]} : vector<8x128xf32> to vector<8x96xf32>
    %343 = arith.negf %342 : vector<8x96xf32>
    %344 = math.exp %343 : vector<8x96xf32>
    %cst_89 = arith.constant 1.000000e+00 : f32
    %345 = vector.broadcast %cst_89 : f32 to vector<8x96xf32>
    %346 = arith.addf %345, %344 : vector<8x96xf32>
    %347 = arith.divf %345, %346 : vector<8x96xf32>
    %348 = vector.extract_strided_slice %341 {offsets = [0, 96], sizes = [8, 32], strides = [1, 1]} : vector<8x128xf32> to vector<8x32xf32>
    %349 = math.tanh %348 : vector<8x32xf32>
    %350 = vector.extract_strided_slice %347 {offsets = [0, 0], sizes = [8, 32], strides = [1, 1]} : vector<8x96xf32> to vector<8x32xf32>
    %351 = vector.extract_strided_slice %347 {offsets = [0, 32], sizes = [8, 32], strides = [1, 1]} : vector<8x96xf32> to vector<8x32xf32>
    %352 = vector.extract_strided_slice %347 {offsets = [0, 64], sizes = [8, 32], strides = [1, 1]} : vector<8x96xf32> to vector<8x32xf32>
    %353 = arith.mulf %351, %330 : vector<8x32xf32>
    %354 = arith.mulf %350, %349 : vector<8x32xf32>
    %355 = arith.addf %353, %354 : vector<8x32xf32>
    %356 = math.tanh %355 : vector<8x32xf32>
    %357 = arith.mulf %352, %356 : vector<8x32xf32>
    %358 = vector.extract_strided_slice %357 {offsets = [0, 0], sizes = [8, 16], strides = [1, 1]} : vector<8x32xf32> to vector<8x16xf32>
    %c32_90 = arith.constant 32 : index
    %c0_91 = arith.constant 0 : index
    %359 = vector.load %arg16[%c32_90, %c0_91] : memref<64x32xf32, #tpu.memory_space<vmem>>, vector<8x16xf32>
    tpu.vector_store %arg16[%c32_90, %c0_91], %358 {strides = array<i32>} : memref<64x32xf32, #tpu.memory_space<vmem>>, vector<8x16xf32>,
    %360 = vector.extract_strided_slice %357 {offsets = [0, 16], sizes = [8, 16], strides = [1, 1]} : vector<8x32xf32> to vector<8x16xf32>
    %c24_92 = arith.constant 24 : index
    %c16_93 = arith.constant 16 : index
    %361 = vector.load %arg16[%c24_92, %c16_93] : memref<64x32xf32, #tpu.memory_space<vmem>>, vector<8x16xf32>
    tpu.vector_store %arg16[%c24_92, %c16_93], %360 {strides = array<i32>} : memref<64x32xf32, #tpu.memory_space<vmem>>, vector<8x16xf32>,
    %362 = vector.extract_strided_slice %234 {offsets = [40, 0], sizes = [8, 128], strides = [1, 1]} : vector<64x128xf32> to vector<8x128xf32>
    %363 = vector.extract_strided_slice %234 {offsets = [16, 0], sizes = [8, 128], strides = [1, 1]} : vector<64x128xf32> to vector<8x128xf32>
    %364 = arith.select %18, %362, %363 : vector<8x128xi1>, vector<8x128xf32>
    %cst_94 = arith.constant dense<0.000000e+00> : vector<8x128xf32>
    %365 = tpu.matmul %357, %230, %cst_94 {dimension_numbers = #tpu.dot_dimension_numbers<[1], [0], [0], [1], [0, 0, 1, 1], [], []>} : vector<8x32xf32>, vector<32x128xf32>, vector<8x128xf32> -> vector<8x128xf32>
    %366 = arith.addf %364, %365 : vector<8x128xf32>
    %367 = vector.extract_strided_slice %366 {offsets = [0, 0], sizes = [8, 96], strides = [1, 1]} : vector<8x128xf32> to vector<8x96xf32>
    %368 = arith.negf %367 : vector<8x96xf32>
    %369 = math.exp %368 : vector<8x96xf32>
    %cst_95 = arith.constant 1.000000e+00 : f32
    %370 = vector.broadcast %cst_95 : f32 to vector<8x96xf32>
    %371 = arith.addf %370, %369 : vector<8x96xf32>
    %372 = arith.divf %370, %371 : vector<8x96xf32>
    %373 = vector.extract_strided_slice %366 {offsets = [0, 96], sizes = [8, 32], strides = [1, 1]} : vector<8x128xf32> to vector<8x32xf32>
    %374 = math.tanh %373 : vector<8x32xf32>
    %375 = vector.extract_strided_slice %372 {offsets = [0, 0], sizes = [8, 32], strides = [1, 1]} : vector<8x96xf32> to vector<8x32xf32>
    %376 = vector.extract_strided_slice %372 {offsets = [0, 32], sizes = [8, 32], strides = [1, 1]} : vector<8x96xf32> to vector<8x32xf32>
    %377 = vector.extract_strided_slice %372 {offsets = [0, 64], sizes = [8, 32], strides = [1, 1]} : vector<8x96xf32> to vector<8x32xf32>
    %378 = arith.mulf %376, %355 : vector<8x32xf32>
    %379 = arith.mulf %375, %374 : vector<8x32xf32>
    %380 = arith.addf %378, %379 : vector<8x32xf32>
    %381 = math.tanh %380 : vector<8x32xf32>
    %382 = arith.mulf %377, %381 : vector<8x32xf32>
    %383 = vector.extract_strided_slice %382 {offsets = [0, 0], sizes = [8, 16], strides = [1, 1]} : vector<8x32xf32> to vector<8x16xf32>
    %c40_96 = arith.constant 40 : index
    %c0_97 = arith.constant 0 : index
    %384 = vector.load %arg16[%c40_96, %c0_97] : memref<64x32xf32, #tpu.memory_space<vmem>>, vector<8x16xf32>
    tpu.vector_store %arg16[%c40_96, %c0_97], %383 {strides = array<i32>} : memref<64x32xf32, #tpu.memory_space<vmem>>, vector<8x16xf32>,
    %385 = vector.extract_strided_slice %382 {offsets = [0, 16], sizes = [8, 16], strides = [1, 1]} : vector<8x32xf32> to vector<8x16xf32>
    %c16_98 = arith.constant 16 : index
    %c16_99 = arith.constant 16 : index
    %386 = vector.load %arg16[%c16_98, %c16_99] : memref<64x32xf32, #tpu.memory_space<vmem>>, vector<8x16xf32>
    tpu.vector_store %arg16[%c16_98, %c16_99], %385 {strides = array<i32>} : memref<64x32xf32, #tpu.memory_space<vmem>>, vector<8x16xf32>,
    %387 = vector.extract_strided_slice %234 {offsets = [48, 0], sizes = [8, 128], strides = [1, 1]} : vector<64x128xf32> to vector<8x128xf32>
    %388 = vector.extract_strided_slice %234 {offsets = [8, 0], sizes = [8, 128], strides = [1, 1]} : vector<64x128xf32> to vector<8x128xf32>
    %389 = arith.select %18, %387, %388 : vector<8x128xi1>, vector<8x128xf32>
    %cst_100 = arith.constant dense<0.000000e+00> : vector<8x128xf32>
    %390 = tpu.matmul %382, %230, %cst_100 {dimension_numbers = #tpu.dot_dimension_numbers<[1], [0], [0], [1], [0, 0, 1, 1], [], []>} : vector<8x32xf32>, vector<32x128xf32>, vector<8x128xf32> -> vector<8x128xf32>
    %391 = arith.addf %389, %390 : vector<8x128xf32>
    %392 = vector.extract_strided_slice %391 {offsets = [0, 0], sizes = [8, 96], strides = [1, 1]} : vector<8x128xf32> to vector<8x96xf32>
    %393 = arith.negf %392 : vector<8x96xf32>
    %394 = math.exp %393 : vector<8x96xf32>
    %cst_101 = arith.constant 1.000000e+00 : f32
    %395 = vector.broadcast %cst_101 : f32 to vector<8x96xf32>
    %396 = arith.addf %395, %394 : vector<8x96xf32>
    %397 = arith.divf %395, %396 : vector<8x96xf32>
    %398 = vector.extract_strided_slice %391 {offsets = [0, 96], sizes = [8, 32], strides = [1, 1]} : vector<8x128xf32> to vector<8x32xf32>
    %399 = math.tanh %398 : vector<8x32xf32>
    %400 = vector.extract_strided_slice %397 {offsets = [0, 0], sizes = [8, 32], strides = [1, 1]} : vector<8x96xf32> to vector<8x32xf32>
    %401 = vector.extract_strided_slice %397 {offsets = [0, 32], sizes = [8, 32], strides = [1, 1]} : vector<8x96xf32> to vector<8x32xf32>
    %402 = vector.extract_strided_slice %397 {offsets = [0, 64], sizes = [8, 32], strides = [1, 1]} : vector<8x96xf32> to vector<8x32xf32>
    %403 = arith.mulf %401, %380 : vector<8x32xf32>
    %404 = arith.mulf %400, %399 : vector<8x32xf32>
    %405 = arith.addf %403, %404 : vector<8x32xf32>
    %406 = math.tanh %405 : vector<8x32xf32>
    %407 = arith.mulf %402, %406 : vector<8x32xf32>
    %408 = vector.extract_strided_slice %407 {offsets = [0, 0], sizes = [8, 16], strides = [1, 1]} : vector<8x32xf32> to vector<8x16xf32>
    %c48_102 = arith.constant 48 : index
    %c0_103 = arith.constant 0 : index
    %409 = vector.load %arg16[%c48_102, %c0_103] : memref<64x32xf32, #tpu.memory_space<vmem>>, vector<8x16xf32>
    tpu.vector_store %arg16[%c48_102, %c0_103], %408 {strides = array<i32>} : memref<64x32xf32, #tpu.memory_space<vmem>>, vector<8x16xf32>,
    %410 = vector.extract_strided_slice %407 {offsets = [0, 16], sizes = [8, 16], strides = [1, 1]} : vector<8x32xf32> to vector<8x16xf32>
    %c8_104 = arith.constant 8 : index
    %c16_105 = arith.constant 16 : index
    %411 = vector.load %arg16[%c8_104, %c16_105] : memref<64x32xf32, #tpu.memory_space<vmem>>, vector<8x16xf32>
    tpu.vector_store %arg16[%c8_104, %c16_105], %410 {strides = array<i32>} : memref<64x32xf32, #tpu.memory_space<vmem>>, vector<8x16xf32>,
    %412 = vector.extract_strided_slice %234 {offsets = [56, 0], sizes = [8, 128], strides = [1, 1]} : vector<64x128xf32> to vector<8x128xf32>
    %413 = vector.extract_strided_slice %234 {offsets = [0, 0], sizes = [8, 128], strides = [1, 1]} : vector<64x128xf32> to vector<8x128xf32>
    %414 = arith.select %18, %412, %413 : vector<8x128xi1>, vector<8x128xf32>
    %cst_106 = arith.constant dense<0.000000e+00> : vector<8x128xf32>
    %415 = tpu.matmul %407, %230, %cst_106 {dimension_numbers = #tpu.dot_dimension_numbers<[1], [0], [0], [1], [0, 0, 1, 1], [], []>} : vector<8x32xf32>, vector<32x128xf32>, vector<8x128xf32> -> vector<8x128xf32>
    %416 = arith.addf %414, %415 : vector<8x128xf32>
    %417 = vector.extract_strided_slice %416 {offsets = [0, 0], sizes = [8, 96], strides = [1, 1]} : vector<8x128xf32> to vector<8x96xf32>
    %418 = arith.negf %417 : vector<8x96xf32>
    %419 = math.exp %418 : vector<8x96xf32>
    %cst_107 = arith.constant 1.000000e+00 : f32
    %420 = vector.broadcast %cst_107 : f32 to vector<8x96xf32>
    %421 = arith.addf %420, %419 : vector<8x96xf32>
    %422 = arith.divf %420, %421 : vector<8x96xf32>
    %423 = vector.extract_strided_slice %416 {offsets = [0, 96], sizes = [8, 32], strides = [1, 1]} : vector<8x128xf32> to vector<8x32xf32>
    %424 = math.tanh %423 : vector<8x32xf32>
    %425 = vector.extract_strided_slice %422 {offsets = [0, 0], sizes = [8, 32], strides = [1, 1]} : vector<8x96xf32> to vector<8x32xf32>
    %426 = vector.extract_strided_slice %422 {offsets = [0, 32], sizes = [8, 32], strides = [1, 1]} : vector<8x96xf32> to vector<8x32xf32>
    %427 = vector.extract_strided_slice %422 {offsets = [0, 64], sizes = [8, 32], strides = [1, 1]} : vector<8x96xf32> to vector<8x32xf32>
    %428 = arith.mulf %426, %405 : vector<8x32xf32>
    %429 = arith.mulf %425, %424 : vector<8x32xf32>
    %430 = arith.addf %428, %429 : vector<8x32xf32>
    %431 = math.tanh %430 : vector<8x32xf32>
    %432 = arith.mulf %427, %431 : vector<8x32xf32>
    %433 = vector.extract_strided_slice %432 {offsets = [0, 0], sizes = [8, 16], strides = [1, 1]} : vector<8x32xf32> to vector<8x16xf32>
    %c56_108 = arith.constant 56 : index
    %c0_109 = arith.constant 0 : index
    %434 = vector.load %arg16[%c56_108, %c0_109] : memref<64x32xf32, #tpu.memory_space<vmem>>, vector<8x16xf32>
    tpu.vector_store %arg16[%c56_108, %c0_109], %433 {strides = array<i32>} : memref<64x32xf32, #tpu.memory_space<vmem>>, vector<8x16xf32>,
    %435 = vector.extract_strided_slice %432 {offsets = [0, 16], sizes = [8, 16], strides = [1, 1]} : vector<8x32xf32> to vector<8x16xf32>
    %c0_110 = arith.constant 0 : index
    %c16_111 = arith.constant 16 : index
    %436 = vector.load %arg16[%c0_110, %c16_111] : memref<64x32xf32, #tpu.memory_space<vmem>>, vector<8x16xf32>
    tpu.vector_store %arg16[%c0_110, %c16_111], %435 {strides = array<i32>} : memref<64x32xf32, #tpu.memory_space<vmem>>, vector<8x16xf32>,
    %c0_112 = arith.constant 0 : index
    %c0_113 = arith.constant 0 : index
    %437 = vector.load %arg16[%c0_112, %c0_113] : memref<64x32xf32, #tpu.memory_space<vmem>>, vector<64x32xf32>
    %c0_114 = arith.constant 0 : index
    %c0_115 = arith.constant 0 : index
    %438 = vector.load %arg1[%c0_114, %c0_115] : memref<64x32xf32, #tpu.memory_space<vmem>>, vector<64x32xf32>
    %439 = arith.mulf %437, %438 : vector<64x32xf32>
    %440 = vector.extract_strided_slice %439 {offsets = [0, 0], sizes = [8, 32], strides = [1, 1]} : vector<64x32xf32> to vector<8x32xf32>
    %441 = vector.extract_strided_slice %439 {offsets = [8, 0], sizes = [8, 32], strides = [1, 1]} : vector<64x32xf32> to vector<8x32xf32>
    %442 = arith.addf %440, %441 : vector<8x32xf32>
    %443 = vector.extract_strided_slice %439 {offsets = [16, 0], sizes = [8, 32], strides = [1, 1]} : vector<64x32xf32> to vector<8x32xf32>
    %444 = arith.addf %442, %443 : vector<8x32xf32>
    %445 = vector.extract_strided_slice %439 {offsets = [24, 0], sizes = [8, 32], strides = [1, 1]} : vector<64x32xf32> to vector<8x32xf32>
    %446 = arith.addf %444, %445 : vector<8x32xf32>
    %447 = vector.extract_strided_slice %439 {offsets = [32, 0], sizes = [8, 32], strides = [1, 1]} : vector<64x32xf32> to vector<8x32xf32>
    %448 = arith.addf %446, %447 : vector<8x32xf32>
    %449 = vector.extract_strided_slice %439 {offsets = [40, 0], sizes = [8, 32], strides = [1, 1]} : vector<64x32xf32> to vector<8x32xf32>
    %450 = arith.addf %448, %449 : vector<8x32xf32>
    %451 = vector.extract_strided_slice %439 {offsets = [48, 0], sizes = [8, 32], strides = [1, 1]} : vector<64x32xf32> to vector<8x32xf32>
    %452 = arith.addf %450, %451 : vector<8x32xf32>
    %453 = vector.extract_strided_slice %439 {offsets = [56, 0], sizes = [8, 32], strides = [1, 1]} : vector<64x32xf32> to vector<8x32xf32>
    %454 = arith.addf %452, %453 : vector<8x32xf32>
    %455 = vector.extract_strided_slice %454 {offsets = [0, 0], sizes = [2, 32], strides = [1, 1]} : vector<8x32xf32> to vector<2x32xf32>
    %456 = vector.extract_strided_slice %454 {offsets = [2, 0], sizes = [2, 32], strides = [1, 1]} : vector<8x32xf32> to vector<2x32xf32>
    %457 = arith.addf %455, %456 : vector<2x32xf32>
    %458 = vector.extract_strided_slice %454 {offsets = [4, 0], sizes = [2, 32], strides = [1, 1]} : vector<8x32xf32> to vector<2x32xf32>
    %459 = arith.addf %457, %458 : vector<2x32xf32>
    %460 = vector.extract_strided_slice %454 {offsets = [6, 0], sizes = [2, 32], strides = [1, 1]} : vector<8x32xf32> to vector<2x32xf32>
    %461 = arith.addf %459, %460 : vector<2x32xf32>
    %cst_116 = arith.constant 3.125000e-02 : f32
    %462 = vector.broadcast %cst_116 : f32 to vector<2x32xf32>
    %463 = arith.mulf %461, %462 : vector<2x32xf32>
    %c0_117 = arith.constant 0 : index
    %c0_118 = arith.constant 0 : index
    %464 = vector.load %arg8[%c0_117, %c0_118] : memref<32x32xf32, #tpu.memory_space<vmem>>, vector<32x32xf32>
    %cst_119 = arith.constant dense<0.000000e+00> : vector<2x32xf32>
    %465 = tpu.matmul %463, %464, %cst_119 {dimension_numbers = #tpu.dot_dimension_numbers<[1], [0], [0], [1], [0, 0, 1, 1], [], []>} : vector<2x32xf32>, vector<32x32xf32>, vector<2x32xf32> -> vector<2x32xf32>
    %c0_120 = arith.constant 0 : index
    %c0_121 = arith.constant 0 : index
    %466 = vector.load %arg9[%c0_120, %c0_121] : memref<1x32xf32, #tpu.memory_space<vmem>>, vector<1x32xf32>
    %467 = vector.broadcast %466 : vector<1x32xf32> to vector<2x32xf32>
    %468 = arith.addf %465, %467 : vector<2x32xf32>
    %469 = math.tanh %468 : vector<2x32xf32>
    %c0_122 = arith.constant 0 : index
    %c0_123 = arith.constant 0 : index
    %470 = vector.load %arg10[%c0_122, %c0_123] : memref<32x16xf32, #tpu.memory_space<vmem>>, vector<32x16xf32>
    %cst_124 = arith.constant dense<0.000000e+00> : vector<2x16xf32>
    %471 = tpu.matmul %469, %470, %cst_124 {dimension_numbers = #tpu.dot_dimension_numbers<[1], [0], [0], [1], [0, 0, 1, 1], [], []>} : vector<2x32xf32>, vector<32x16xf32>, vector<2x16xf32> -> vector<2x16xf32>
    %c0_125 = arith.constant 0 : index
    %c0_126 = arith.constant 0 : index
    %472 = vector.load %arg11[%c0_125, %c0_126] : memref<1x16xf32, #tpu.memory_space<vmem>>, vector<1x16xf32>
    %473 = vector.broadcast %472 : vector<1x16xf32> to vector<2x16xf32>
    %474 = arith.addf %471, %473 : vector<2x16xf32>
    %475 = math.tanh %474 : vector<2x16xf32>
    %c0_127 = arith.constant 0 : index
    %c0_128 = arith.constant 0 : index
    %476 = vector.load %arg12[%c0_127, %c0_128] : memref<1x16xf32, #tpu.memory_space<vmem>>, vector<1x16xf32>
    %477 = vector.broadcast %476 : vector<1x16xf32> to vector<2x16xf32>
    %478 = arith.mulf %475, %477 : vector<2x16xf32>
    %cst_129 = arith.constant dense<0.000000e+00> : vector<2xf32>
    %479 = vector.multi_reduction <add>, %478, %cst_129 [1] : vector<2x16xf32> to vector<2xf32>
    %480 = vector.shape_cast %479 : vector<2xf32> to vector<2x1xf32>
    %c0_130 = arith.constant 0 : index
    %c0_131 = arith.constant 0 : index
    %481 = vector.load %arg13[%c0_130, %c0_131] : memref<1x1xf32, #tpu.memory_space<vmem>>, vector<1x1xf32>
    %482 = vector.broadcast %481 : vector<1x1xf32> to vector<2x1xf32>
    %483 = arith.addf %480, %482 : vector<2x1xf32>
    %484 = math.tanh %483 : vector<2x1xf32>
    %c0_132 = arith.constant 0 : index
    %c0_133 = arith.constant 0 : index
    %485 = vector.load %arg14[%c0_132, %c0_133] : memref<2x1xf32, #tpu.memory_space<vmem>>, vector<2x1xf32>
    tpu.vector_store %arg14[%c0_132, %c0_133], %484 {strides = array<i32>} : memref<2x1xf32, #tpu.memory_space<vmem>>, vector<2x1xf32>,
    return
  }
}

</mosaic_0001>

<bundles_post_ra>
// kernel: tpu_custom_call.1
= control target key start
LH: loop header
LB: loop body
LE: loop exit
PB: predicated region body
PF: predicated region fallthrough
CT: control target
= control target key end

     0   :  { %vm82_vm0 = vcmask 130048   ;;  %v1624_v10 = vmov 0.0   ;;  %v49_v21 = vlaneseq  ;;  %vm149_vm6 = vcmask 261120   ;;  %s2207_s2 = inlined_call_operand.vmem [shape: f32[16,128], index: 2, kind: input, shape index: {}]   ;;  %s2208_s0 = inlined_call_operand.vmem [shape: f32[64,16], index: 0, kind: input, shape index: {}]   ;;  %s2209_s4 = inlined_call_operand.vmem [shape: f32[1,128], index: 4, kind: input, shape index: {}]   ;;  %s2210_s3 = inlined_call_operand.vmem [shape: f32[32,128], index: 3, kind: input, shape index: {}]   ;;  %s2211_s7 = inlined_call_operand.vmem [shape: f32[1,128], index: 7, kind: input, shape index: {}]   ;;  %s2212_s5 = inlined_call_operand.vmem [shape: f32[32,128], index: 5, kind: input, shape index: {}]   ;;  %s2213_s6 = inlined_call_operand.vmem [shape: f32[32,128], index: 6, kind: input, shape index: {}]   ;;  %s2214_s9 = inlined_call_operand.vmem [shape: f32[1,32], index: 9, kind: input, shape index: {}]   ;;  %s2215_s8 = inlined_call_operand.vmem [shape: f32[32,32], index: 8, kind: input, shape index: {}]   ;;  %s2216_s1 = inlined_call_operand.vmem [shape: f32[64,32], index: 1, kind: input, shape index: {}]   ;;  %s2217_s11 = inlined_call_operand.vmem [shape: f32[1,16], index: 11, kind: input, shape index: {}]   ;;  %s2218_s10 = inlined_call_operand.vmem [shape: f32[32,16], index: 10, kind: input, shape index: {}]   ;;  %s2219_s12 = inlined_call_operand.vmem [shape: f32[1,16], index: 12, kind: input, shape index: {}]   ;;  %s2220_s13 = inlined_call_operand.<no memory space> [shape: f32[1,1], index: 13, kind: input, shape index: {}]   ;;  %s2221_s14 = inlined_call_operand.vmem [shape: f32[2,1], index: 14, kind: output, shape index: {}]  }
   0x1   :  { %v73_v0 = vld [vmem:[%s2207_s2 + $0x8] sm:$0xff]  ;;  %v72_v1 = vld [vmem:[%s2207_s2] sm:$0xff]  ;;  %v66_v4 = vld [vmem:[%s2208_s0 + $0x10] sm:$0xff]  ;;  %vm216_vm7 = vcmask 261248  }
   0x2   :  { %121 = vmatpush.msra.mxu0 %v73_v0  ;;  %v64_v2 = vld [vmem:[%s2208_s0] sm:$0xff]  ;;  %v65_v3 = vld [vmem:[%s2208_s0 + $0x8] sm:$0xff]  ;;  %v1723_v5 = vld [vmem:[%s2210_s3 + $0x18] sm:$0xff]  ;;  %v50_v23 = vand.u32 127, %v49_v21 }
   0x3   :  { %v1728_v6 = vld [vmem:[%s2210_s3 + $0x10] sm:$0xff]  ;;  %165 = vmatpush.msra.mxu1 %v1723_v5  ;;  %233 = vmatpush.msra.mxu2 %v1723_v5  ;;  %v67_v7 = vld [vmem:[%s2208_s0 + $0x18] sm:$0xff]  ;;  %v1744_v8 = vld [vmem:[%s2210_s3 + $0x8] sm:$0xff] }
   0x4   :  { %122 = vmatpush.msra.mxu0 %v72_v1  ;;  %501 = vmatpush.msra.mxu3 %v1723_v5  ;;  %v1751_v9 = vld [vmem:[%s2210_s3] sm:$0xff]  ;;  %v69_v12 = vld [vmem:[%s2208_s0 + $0x28] sm:$0xff]  ;;  %v70_v13 = vld [vmem:[%s2208_s0 + $0x30] sm:$0xff]  ;;  %v55_v25 = vand.u32 31, %v50_v23 }
   0x5   :  { %1433 = vmatmul.msk.f32.vlgmr.msra.gmra.mxu0 %vm82_vm0, %v64_v2  ;;  %166 = vmatpush.msra.mxu1 %v1728_v6  ;;  %v68_v11 = vld [vmem:[%s2208_s0 + $0x20] sm:$0xff]  ;;  %v71_v14 = vld [vmem:[%s2208_s0 + $0x38] sm:$0xff]  ;;  %s1625_s0 = smov 32  }
   0x6   :  { %300 = vmatpush.msrb.mxu0 %v1723_v5  ;;  %234 = vmatpush.msra.mxu2 %v1728_v6  ;;  %v1484_v16 = vld [vmem:[%s2209_s4] ss:$0 sm:$0xff]  ;;  %vm1798_vm1 = vcmp.lt.s32.totalorder %v55_v25, 16  ;;  %s1626_s4 = smov 64  }
   0x7   :  { %502 = vmatpush.msra.mxu3 %v1728_v6  ;;  %167 = vmatpush.msra.mxu1 %v1744_v8 }
   0x8   :  { %301 = vmatpush.msrb.mxu0 %v1728_v6  ;;  %235 = vmatpush.msra.mxu2 %v1744_v8 }
   0x9   :  { %168 = vmatpush.msra.mxu1 %v1751_v9  ;;  %503 = vmatpush.msra.mxu3 %v1744_v8 }
   0xa   :  { %302 = vmatpush.msrb.mxu0 %v1744_v8  ;;  %169 = vmatmul.f32.vlgmr.msra.gmra.mxu1 %v1624_v10 }
   0xb   :  { %236 = vmatpush.msra.mxu2 %v1751_v9  ;;  %367 = vmatpush.msrb.mxu1 %v1723_v5 }
   0xc   :  { %303 = vmatpush.msrb.mxu0 %v1751_v9  ;;  %504 = vmatpush.msra.mxu3 %v1751_v9 }
   0xd   :  { %1434 = vmatmul.msk.f32.gmra.mxu0 %vm82_vm0, %v65_v3  ;;  %434 = vmatpush.msrb.mxu2 %v1723_v5 }
   0xe   :  { %368 = vmatpush.msrb.mxu1 %v1728_v6 }
   0xf   :  { %435 = vmatpush.msrb.mxu2 %v1728_v6 }
  0x10   :  { %369 = vmatpush.msrb.mxu1 %v1744_v8 }
  0x11   :  { %436 = vmatpush.msrb.mxu2 %v1744_v8 }
  0x12   :  { %370 = vmatpush.msrb.mxu1 %v1751_v9 }
  0x13   :  { %437 = vmatpush.msrb.mxu2 %v1751_v9 }
  0x14   :  { %568 = vmatpush.msra.mxu1 %v1723_v5 }
  0x15   :  { %1435 = vmatmul.msk.f32.gmra.mxu0 %vm82_vm0, %v66_v4 }
  0x16   :  { %569 = vmatpush.msra.mxu1 %v1728_v6 }
  0x18   :  { %570 = vmatpush.msra.mxu1 %v1744_v8 }
  0x1a   :  { %571 = vmatpush.msra.mxu1 %v1751_v9 }
  0x1d   :  { %1436 = vmatmul.msk.f32.gmra.mxu0 %vm82_vm0, %v67_v7 }
  0x25   :  { %1437 = vmatmul.msk.f32.gmra.mxu0 %vm82_vm0, %v68_v11 }
  0x2d   :  { %1438 = vmatmul.msk.f32.gmra.mxu0 %vm82_vm0, %v69_v12 }
  0x35   :  { %1439 = vmatmul.msk.f32.gmra.mxu0 %vm82_vm0, %v70_v13 }
  0x3d   :  { %1440 = vmatmul.msk.f32.gmra.mxu0 %vm82_vm0, %v71_v14 }
  0x82   :  { %v124_v15 = vpop.f32.mrf.mxu0 }
  0x83   :  { %v1832_v40 = vadd.f32 %v1484_v16, %v124_v15 }
  0x87   :  { %v170_v42 = vpop.f32.mrf.mxu1 }
  0x8a   :  { %v127_v17 = vpop.f32.mrf.mxu0 }
  0x8b   :  { %v1792_v18 = vadd.f32 %v1484_v16, %v127_v17 }
  0x92   :  { %v130_v19 = vpop.f32.mrf.mxu0 }
  0x93   :  { %v1794_v20 = vadd.f32 %v1484_v16, %v130_v19 }
  0x9a   :  { %v133_v22 = vpop.f32.mrf.mxu0 }
  0x9b   :  { %v1796_v24 = vadd.f32 %v1484_v16, %v133_v22 }
  0xa2   :  { %v136_v26 = vpop.f32.mrf.mxu0 }
  0xa3   :  { %v1802_v28 = vadd.f32 %v1484_v16, %v136_v26 }
  0xa5   :  { %v352_v29 = vsel %vm1798_vm1, %v1796_v24, %v1802_v28  ;;  %v419_v30 = vsel %vm1798_vm1, %v1802_v28, %v1796_v24 }
  0xaa   :  { %v139_v31 = vpop.f32.mrf.mxu0 }
  0xab   :  { %v1812_v32 = vadd.f32 %v1484_v16, %v139_v31 }
  0xad   :  { %v285_v33 = vsel %vm1798_vm1, %v1794_v20, %v1812_v32  ;;  %v486_v34 = vsel %vm1798_vm1, %v1812_v32, %v1794_v20 }
  0xb2   :  { %v142_v35 = vpop.f32.mrf.mxu0 }
  0xb3   :  { %v1822_v36 = vadd.f32 %v1484_v16, %v142_v35 }
  0xb5   :  { %v218_v37 = vsel %vm1798_vm1, %v1792_v18, %v1822_v36  ;;  %v553_v38 = vsel %vm1798_vm1, %v1822_v36, %v1792_v18 }
  0xba   :  { %v145_v39 = vpop.f32.mrf.mxu0 }
  0xbb   :  { %v1834_v41 = vadd.f32 %v1484_v16, %v145_v39 }
  0xbd   :  { %v148_v43 = vsel %vm1798_vm1, %v1832_v40, %v1834_v41  ;;  %v620_v44 = vsel %vm1798_vm1, %v1834_v41, %v1832_v40 }
  0xbe   :  { %v173_v45 = vadd.f32 %v170_v42, %v148_v43 }
  0xc0   :  { %1490 = vtanh.f32 %v173_v45  ;;  %v1441_v47 = vmul.f32 -1.442695, %v173_v45 }
  0xc2   :  { %1492 = vpow2.f32 %v1441_v47 }
  0xc6   :  { %v1491_v46 = vpop.eup %1490 }
  0xc7   :  { %196 = vrot.lane.b32.xlu0 %v1491_v46, %s1625_s0 }
  0xc8   :  { %v1493_v48 = vpop.eup %1492 }
  0xc9   :  { %v177_v49 = vadd.f32 1.0, %v1493_v48 }
  0xcb   :  { %1494 = vrcp.f32 %v177_v49  ;;  %v189_v55 = vand.u32 2147483648, %v177_v49  ;;  %vm183_vm3 = vweird.f32 %v177_v49  ;;  %v187_v56 = vand.u32 2147483647, %v177_v49 }
  0xcd   :  { %v190_v58 = vor.u32 1.1754944e-38, %v189_v55  ;;  %vm188_vm5 = vcmp.eq.f32.partialorder %v187_v56, 8.507059e+37 }
  0xd1   :  { %v1495_v50 = vpop.eup %1494 }
  0xd2   :  { %v179_v51 = vmul.f32 %v1495_v50, %v177_v49  ;;  %vm184_vm2 = vweird.f32 %v1495_v50 }
  0xd3   :  { %vm185_vm4 = vmor %vm183_vm3, %vm184_vm2 }
  0xd4   :  { %v180_v52 = vsub.f32 1.0, %v179_v51 }
  0xd6   :  { %v181_v53 = vmul.f32 %v1495_v50, %v180_v52 }
  0xd8   :  { %v182_v54 = vadd.f32 %v1495_v50, %v181_v53 }
  0xda   :  { %v186_v57 = vsel %vm185_vm4, %v1495_v50, %v182_v54 }
  0xdb   :  { %v191_v60 = vsel %vm188_vm5, %v190_v58, %v186_v57 }
  0xdc   :  { %v194_v62 = vmul.f32 0.0, %v191_v60 }
 0x139   :  { %v197_v59 = vpop.permute.xlu0 %196 }
 0x13a   :  { %v199_v61 = vmul.f32 %v197_v59, %v191_v60 }
 0x13c   :  { %201 = vrot.lane.b32.xlu0 %v199_v61, %s1625_s0 }
 0x1ae   :  { %v202_v63 = vpop.permute.xlu0 %201 }
 0x1af   :  { %v204_v0 = vadd.f32 %v202_v63, %v194_v62 }
 0x1b1   :  { %1496 = vtanh.f32 %v204_v0 }
 0x1b7   :  { %v1497_v1 = vpop.eup %1496 }
 0x1b8   :  { %207 = vrot.lane.b32.xlu1 %v1497_v1, %s1625_s0 }
 0x22a   :  { %v208_v2 = vpop.permute.xlu1 %207 }
 0x22b   :  { %v210_v3 = vmul.f32 %v208_v2, %v191_v60 }
 0x22d   :  { %212 = vrot.lane.b32.xlu1 %v210_v3, %s1626_s4 }
 0x29f   :  { %v213_v4 = vpop.permute.xlu1 %212 }
 0x2a0   :  { %215 = vst.msk [vmem:[#allocation2] sm:$0xff] %vm82_vm0, %v213_v4  ;;  %1442 = vmatmul.msk.f32.vlgmr.msra.gmra.mxu2 %vm149_vm6, %v213_v4 }
 0x2a1   :  { %217 = vst.msk [vmem:[#allocation2 + $0x38] sm:$0xff] %vm216_vm7, %v213_v4  ;;  %635 = vmatpush.msra.mxu2 %v1723_v5 }
 0x2a3   :  { %636 = vmatpush.msra.mxu2 %v1728_v6 }
 0x2a5   :  { %637 = vmatpush.msra.mxu2 %v1744_v8 }
 0x2a7   :  { %638 = vmatpush.msra.mxu2 %v1751_v9 }
 0x323   :  { %v238_v7 = vpop.f32.mrf.mxu2 }
 0x324   :  { %v241_v11 = vadd.f32 %v238_v7, %v218_v37 }
 0x326   :  { %1498 = vtanh.f32 %v241_v11  ;;  %v1443_v13 = vmul.f32 -1.442695, %v241_v11 }
 0x328   :  { %1500 = vpow2.f32 %v1443_v13 }
 0x32c   :  { %v1499_v12 = vpop.eup %1498 }
 0x32d   :  { %264 = vrot.lane.b32.xlu2 %v1499_v12, %s1625_s0 }
 0x32e   :  { %v1501_v14 = vpop.eup %1500 }
 0x32f   :  { %v245_v15 = vadd.f32 1.0, %v1501_v14 }
 0x331   :  { %1502 = vrcp.f32 %v245_v15  ;;  %v257_v8 = vand.u32 2147483648, %v245_v15  ;;  %vm251_vm9 = vweird.f32 %v245_v15  ;;  %v255_v9 = vand.u32 2147483647, %v245_v15 }
 0x333   :  { %v258_v22 = vor.u32 1.1754944e-38, %v257_v8  ;;  %vm256_vm11 = vcmp.eq.f32.partialorder %v255_v9, 8.507059e+37 }
 0x337   :  { %v1503_v16 = vpop.eup %1502 }
 0x338   :  { %v247_v17 = vmul.f32 %v1503_v16, %v245_v15  ;;  %vm252_vm8 = vweird.f32 %v1503_v16 }
 0x339   :  { %vm253_vm10 = vmor %vm251_vm9, %vm252_vm8 }
 0x33a   :  { %v248_v5 = vsub.f32 1.0, %v247_v17 }
 0x33c   :  { %v249_v19 = vmul.f32 %v1503_v16, %v248_v5 }
 0x33e   :  { %v250_v6 = vadd.f32 %v1503_v16, %v249_v19 }
 0x340   :  { %v254_v21 = vsel %vm253_vm10, %v1503_v16, %v250_v6 }
 0x341   :  { %v259_v25 = vsel %vm256_vm11, %v258_v22, %v254_v21 }
 0x342   :  { %v262_v31 = vmul.f32 %v259_v25, %v204_v0 }
 0x387   :  { %v265_v23 = vpop.permute.xlu2 %264 }
 0x388   :  { %v267_v26 = vmul.f32 %v265_v23, %v259_v25 }
 0x38a   :  { %269 = vrot.lane.b32.xlu2 %v267_v26, %s1625_s0 }
 0x3e4   :  { %v270_v35 = vpop.permute.xlu2 %269 }
 0x3e5   :  { %v272_v37 = vadd.f32 %v270_v35, %v262_v31 }
 0x3e7   :  { %1504 = vtanh.f32 %v272_v37 }
 0x3ed   :  { %v1505_v39 = vpop.eup %1504 }
 0x3ee   :  { %275 = vrot.lane.b32.xlu0 %v1505_v39, %s1625_s0 }
 0x460   :  { %v276_v42 = vpop.permute.xlu0 %275 }
 0x461   :  { %v278_v43 = vmul.f32 %v276_v42, %v259_v25 }
 0x463   :  { %280 = vrot.lane.b32.xlu1 %v278_v43, %s1626_s4 }
 0x4d5   :  { %v281_v45 = vpop.permute.xlu1 %280 }
 0x4d6   :  { %283 = vst.msk [vmem:[#allocation2 + $0x8] sm:$0xff] %vm82_vm0, %v281_v45  ;;  %1444 = vmatmul.msk.f32.vlgmr.msrb.gmra.mxu0 %vm149_vm6, %v281_v45 }
 0x4d7   :  { %284 = vst.msk [vmem:[#allocation2 + $0x30] sm:$0xff] %vm216_vm7, %v281_v45 }
 0x553   :  { %v305_v46 = vpop.f32.mrf.mxu0 }
 0x554   :  { %v308_v47 = vadd.f32 %v305_v46, %v285_v33 }
 0x556   :  { %1506 = vtanh.f32 %v308_v47  ;;  %v1445_v49 = vmul.f32 -1.442695, %v308_v47 }
 0x558   :  { %1508 = vpow2.f32 %v1445_v49 }
 0x55c   :  { %v1507_v48 = vpop.eup %1506 }
 0x55d   :  { %331 = vrot.lane.b32.xlu2 %v1507_v48, %s1625_s0 }
 0x55e   :  { %v1509_v50 = vpop.eup %1508 }
 0x55f   :  { %v312_v51 = vadd.f32 1.0, %v1509_v50 }
 0x561   :  { %1510 = vrcp.f32 %v312_v51  ;;  %v324_v57 = vand.u32 2147483648, %v312_v51  ;;  %vm318_vm13 = vweird.f32 %v312_v51  ;;  %v322_v58 = vand.u32 2147483647, %v312_v51 }
 0x563   :  { %v325_v59 = vor.u32 1.1754944e-38, %v324_v57  ;;  %vm323_vm15 = vcmp.eq.f32.partialorder %v322_v58, 8.507059e+37 }
 0x567   :  { %v1511_v52 = vpop.eup %1510 }
 0x568   :  { %v314_v53 = vmul.f32 %v1511_v52, %v312_v51  ;;  %vm319_vm12 = vweird.f32 %v1511_v52 }
 0x569   :  { %vm320_vm14 = vmor %vm318_vm13, %vm319_vm12 }
 0x56a   :  { %v315_v54 = vsub.f32 1.0, %v314_v53 }
 0x56c   :  { %v316_v55 = vmul.f32 %v1511_v52, %v315_v54 }
 0x56e   :  { %v317_v56 = vadd.f32 %v1511_v52, %v316_v55 }
 0x570   :  { %v321_v33 = vsel %vm320_vm14, %v1511_v52, %v317_v56 }
 0x571   :  { %v326_v61 = vsel %vm323_vm15, %v325_v59, %v321_v33 }
 0x572   :  { %v329_v63 = vmul.f32 %v326_v61, %v272_v37 }
 0x5b7   :  { %v332_v60 = vpop.permute.xlu2 %331 }
 0x5b8   :  { %v334_v62 = vmul.f32 %v332_v60, %v326_v61 }
 0x5ba   :  { %336 = vrot.lane.b32.xlu0 %v334_v62, %s1625_s0 }
 0x62c   :  { %v337_v0 = vpop.permute.xlu0 %336 }
 0x62d   :  { %v339_v1 = vadd.f32 %v337_v0, %v329_v63 }
 0x62f   :  { %1512 = vtanh.f32 %v339_v1 }
 0x635   :  { %v1513_v2 = vpop.eup %1512 }
 0x636   :  { %342 = vrot.lane.b32.xlu1 %v1513_v2, %s1625_s0 }
 0x6a8   :  { %v343_v3 = vpop.permute.xlu1 %342 }
 0x6a9   :  { %v345_v4 = vmul.f32 %v343_v3, %v326_v61 }
 0x6ab   :  { %347 = vrot.lane.b32.xlu2 %v345_v4, %s1626_s4 }
 0x705   :  { %v348_v7 = vpop.permute.xlu2 %347 }
 0x706   :  { %350 = vst.msk [vmem:[#allocation2 + $0x10] sm:$0xff] %vm82_vm0, %v348_v7  ;;  %1446 = vmatmul.msk.f32.vlgmr.msrb.gmra.mxu1 %vm149_vm6, %v348_v7 }
 0x707   :  { %351 = vst.msk [vmem:[#allocation2 + $0x28] sm:$0xff] %vm216_vm7, %v348_v7 }
 0x783   :  { %v372_v11 = vpop.f32.mrf.mxu1 }
 0x784   :  { %v375_v12 = vadd.f32 %v372_v11, %v352_v29 }
 0x786   :  { %1514 = vtanh.f32 %v375_v12  ;;  %v1447_v14 = vmul.f32 -1.442695, %v375_v12 }
 0x788   :  { %1516 = vpow2.f32 %v1447_v14 }
 0x78c   :  { %v1515_v13 = vpop.eup %1514 }
 0x78d   :  { %398 = vrot.lane.b32.xlu0 %v1515_v13, %s1625_s0 }
 0x78e   :  { %v1517_v15 = vpop.eup %1516 }
 0x78f   :  { %v379_v16 = vadd.f32 1.0, %v1517_v15 }
 0x791   :  { %1518 = vrcp.f32 %v379_v16  ;;  %v391_v9 = vand.u32 2147483648, %v379_v16  ;;  %vm385_vm3 = vweird.f32 %v379_v16  ;;  %v389_v21 = vand.u32 2147483647, %v379_v16 }
 0x793   :  { %v392_v22 = vor.u32 1.1754944e-38, %v391_v9  ;;  %vm390_vm5 = vcmp.eq.f32.partialorder %v389_v21, 8.507059e+37 }
 0x797   :  { %v1519_v17 = vpop.eup %1518 }
 0x798   :  { %v381_v5 = vmul.f32 %v1519_v17, %v379_v16  ;;  %vm386_vm2 = vweird.f32 %v1519_v17 }
 0x799   :  { %vm387_vm4 = vmor %vm385_vm3, %vm386_vm2 }
 0x79a   :  { %v382_v19 = vsub.f32 1.0, %v381_v5 }
 0x79c   :  { %v383_v6 = vmul.f32 %v1519_v17, %v382_v19 }
 0x79e   :  { %v384_v8 = vadd.f32 %v1519_v17, %v383_v6 }
 0x7a0   :  { %v388_v29 = vsel %vm387_vm4, %v1519_v17, %v384_v8 }
 0x7a1   :  { %v393_v25 = vsel %vm390_vm5, %v392_v22, %v388_v29 }
 0x7a2   :  { %v396_v31 = vmul.f32 %v393_v25, %v339_v1 }
 0x7ff   :  { %v399_v23 = vpop.permute.xlu0 %398 }
 0x800   :  { %v401_v26 = vmul.f32 %v399_v23, %v393_v25 }
 0x802   :  { %403 = vrot.lane.b32.xlu1 %v401_v26, %s1625_s0 }
 0x874   :  { %v404_v35 = vpop.permute.xlu1 %403 }
 0x875   :  { %v406_v37 = vadd.f32 %v404_v35, %v396_v31 }
 0x877   :  { %1520 = vtanh.f32 %v406_v37 }
 0x87d   :  { %v1521_v39 = vpop.eup %1520 }
 0x87e   :  { %409 = vrot.lane.b32.xlu2 %v1521_v39, %s1625_s0 }
 0x8d8   :  { %v410_v42 = vpop.permute.xlu2 %409 }
 0x8d9   :  { %v412_v43 = vmul.f32 %v410_v42, %v393_v25 }
 0x8db   :  { %414 = vrot.lane.b32.xlu0 %v412_v43, %s1626_s4 }
 0x94d   :  { %v415_v45 = vpop.permute.xlu0 %414 }
 0x94e   :  { %417 = vst.msk [vmem:[#allocation2 + $0x18] sm:$0xff] %vm82_vm0, %v415_v45  ;;  %1448 = vmatmul.msk.f32.vlgmr.msrb.gmra.mxu2 %vm149_vm6, %v415_v45 }
 0x94f   :  { %418 = vst.msk [vmem:[#allocation2 + $0x20] sm:$0xff] %vm216_vm7, %v415_v45 }
 0x9d1   :  { %v439_v46 = vpop.f32.mrf.mxu2 }
 0x9d2   :  { %v442_v47 = vadd.f32 %v439_v46, %v419_v30 }
 0x9d4   :  { %1522 = vtanh.f32 %v442_v47  ;;  %v1449_v49 = vmul.f32 -1.442695, %v442_v47 }
 0x9d6   :  { %1524 = vpow2.f32 %v1449_v49 }
 0x9da   :  { %v1523_v48 = vpop.eup %1522 }
 0x9db   :  { %465 = vrot.lane.b32.xlu1 %v1523_v48, %s1625_s0 }
 0x9dc   :  { %v1525_v50 = vpop.eup %1524 }
 0x9dd   :  { %v446_v51 = vadd.f32 1.0, %v1525_v50 }
 0x9df   :  { %1526 = vrcp.f32 %v446_v51  ;;  %v458_v57 = vand.u32 2147483648, %v446_v51  ;;  %vm452_vm9 = vweird.f32 %v446_v51  ;;  %v456_v58 = vand.u32 2147483647, %v446_v51 }
 0x9e1   :  { %v459_v28 = vor.u32 1.1754944e-38, %v458_v57  ;;  %vm457_vm11 = vcmp.eq.f32.partialorder %v456_v58, 8.507059e+37 }
 0x9e5   :  { %v1527_v52 = vpop.eup %1526 }
 0x9e6   :  { %v448_v53 = vmul.f32 %v1527_v52, %v446_v51  ;;  %vm453_vm8 = vweird.f32 %v1527_v52 }
 0x9e7   :  { %vm454_vm10 = vmor %vm452_vm9, %vm453_vm8 }
 0x9e8   :  { %v449_v54 = vsub.f32 1.0, %v448_v53 }
 0x9ea   :  { %v450_v55 = vmul.f32 %v1527_v52, %v449_v54 }
 0x9ec   :  { %v451_v56 = vadd.f32 %v1527_v52, %v450_v55 }
 0x9ee   :  { %v455_v24 = vsel %vm454_vm10, %v1527_v52, %v451_v56 }
 0x9ef   :  { %v460_v33 = vsel %vm457_vm11, %v459_v28, %v455_v24 }
 0x9f0   :  { %v463_v60 = vmul.f32 %v460_v33, %v406_v37 }
 0xa4d   :  { %v466_v30 = vpop.permute.xlu1 %465 }
 0xa4e   :  { %v468_v59 = vmul.f32 %v466_v30, %v460_v33 }
 0xa50   :  { %470 = vrot.lane.b32.xlu2 %v468_v59, %s1625_s0 }
 0xaaa   :  { %v471_v61 = vpop.permute.xlu2 %470 }
 0xaab   :  { %v473_v62 = vadd.f32 %v471_v61, %v463_v60 }
 0xaad   :  { %1528 = vtanh.f32 %v473_v62 }
 0xab3   :  { %v1529_v63 = vpop.eup %1528 }
 0xab4   :  { %476 = vrot.lane.b32.xlu0 %v1529_v63, %s1625_s0 }
 0xb26   :  { %v477_v0 = vpop.permute.xlu0 %476 }
 0xb27   :  { %v479_v1 = vmul.f32 %v477_v0, %v460_v33 }
 0xb29   :  { %481 = vrot.lane.b32.xlu1 %v479_v1, %s1626_s4 }
 0xb9b   :  { %v482_v2 = vpop.permute.xlu1 %481 }
 0xb9c   :  { %484 = vst.msk [vmem:[#allocation2 + $0x20] sm:$0xff] %vm82_vm0, %v482_v2  ;;  %1450 = vmatmul.msk.f32.vlgmr.msra.gmra.mxu3 %vm149_vm6, %v482_v2 }
 0xb9d   :  { %485 = vst.msk [vmem:[#allocation2 + $0x18] sm:$0xff] %vm216_vm7, %v482_v2 }
 0xc1f   :  { %v506_v3 = vpop.f32.mrf.mxu3 }
 0xc20   :  { %v509_v4 = vadd.f32 %v506_v3, %v486_v34 }
 0xc22   :  { %1530 = vtanh.f32 %v509_v4  ;;  %v1451_v11 = vmul.f32 -1.442695, %v509_v4 }
 0xc24   :  { %1532 = vpow2.f32 %v1451_v11 }
 0xc28   :  { %v1531_v7 = vpop.eup %1530 }
 0xc29   :  { %532 = vrot.lane.b32.xlu2 %v1531_v7, %s1625_s0 }
 0xc2a   :  { %v1533_v12 = vpop.eup %1532 }
 0xc2b   :  { %v513_v13 = vadd.f32 1.0, %v1533_v12 }
 0xc2d   :  { %1534 = vrcp.f32 %v513_v13  ;;  %v525_v19 = vand.u32 2147483648, %v513_v13  ;;  %vm519_vm13 = vweird.f32 %v513_v13  ;;  %v523_v6 = vand.u32 2147483647, %v513_v13 }
 0xc2f   :  { %v526_v32 = vor.u32 1.1754944e-38, %v525_v19  ;;  %vm524_vm15 = vcmp.eq.f32.partialorder %v523_v6, 8.507059e+37  ;;  %v698_v6 = vld [vmem:[%s2212_s5 + $0x18] sm:$0xff] }
 0xc30   :  { %743 = vmatpush.msrb.mxu3 %v698_v6 }
 0xc33   :  { %v1535_v14 = vpop.eup %1534 }
 0xc34   :  { %v515_v15 = vmul.f32 %v1535_v14, %v513_v13  ;;  %vm520_vm12 = vweird.f32 %v1535_v14 }
 0xc35   :  { %vm521_vm14 = vmor %vm519_vm13, %vm520_vm12 }
 0xc36   :  { %v516_v16 = vsub.f32 1.0, %v515_v15 }
 0xc38   :  { %v517_v17 = vmul.f32 %v1535_v14, %v516_v16 }
 0xc3a   :  { %v518_v5 = vadd.f32 %v1535_v14, %v517_v17 }
 0xc3c   :  { %v522_v20 = vsel %vm521_vm14, %v1535_v14, %v518_v5 }
 0xc3d   :  { %v527_v8 = vsel %vm524_vm15, %v526_v32, %v522_v20  ;;  %v697_v20 = vld [vmem:[%s2212_s5 + $0x10] sm:$0xff]  ;;  %v696_v32 = vld [vmem:[%s2212_s5 + $0x8] sm:$0xff] }
 0xc3e   :  { %v530_v21 = vmul.f32 %v527_v8, %v473_v62  ;;  %744 = vmatpush.msrb.mxu3 %v697_v20 }
 0xc40   :  { %745 = vmatpush.msrb.mxu3 %v696_v32 }
 0xc83   :  { %v533_v34 = vpop.permute.xlu2 %532 }
 0xc84   :  { %v535_v9 = vmul.f32 %v533_v34, %v527_v8  ;;  %v695_v34 = vld [vmem:[%s2212_s5] sm:$0xff] }
 0xc85   :  { %746 = vmatpush.msrb.mxu3 %v695_v34 }
 0xc86   :  { %537 = vrot.lane.b32.xlu0 %v535_v9, %s1625_s0 }
 0xcf8   :  { %v538_v29 = vpop.permute.xlu0 %537 }
 0xcf9   :  { %v540_v22 = vadd.f32 %v538_v29, %v530_v21 }
 0xcfb   :  { %1536 = vtanh.f32 %v540_v22 }
 0xd01   :  { %v1537_v23 = vpop.eup %1536 }
 0xd02   :  { %543 = vrot.lane.b32.xlu1 %v1537_v23, %s1625_s0  ;;  %v1952_v23 = vld [vmem:[%s2213_s6 + $0x18] sm:$0xff] }
 0xd03   :  { %785 = vmatpush.msrb.mxu1 %v1952_v23  ;;  %852 = vmatpush.msrb.mxu2 %v1952_v23 }
 0xd74   :  { %v544_v25 = vpop.permute.xlu1 %543 }
 0xd75   :  { %v546_v26 = vmul.f32 %v544_v25, %v527_v8  ;;  %v1957_v25 = vld [vmem:[%s2213_s6 + $0x10] sm:$0xff] }
 0xd76   :  { %786 = vmatpush.msrb.mxu1 %v1957_v25  ;;  %853 = vmatpush.msrb.mxu2 %v1957_v25 }
 0xd77   :  { %548 = vrot.lane.b32.xlu2 %v546_v26, %s1626_s4  ;;  %v1964_v26 = vld [vmem:[%s2213_s6 + $0x8] sm:$0xff] }
 0xd78   :  { %787 = vmatpush.msrb.mxu1 %v1964_v26  ;;  %854 = vmatpush.msrb.mxu2 %v1964_v26 }
 0xdd1   :  { %v549_v31 = vpop.permute.xlu2 %548 }
 0xdd2   :  { %551 = vst.msk [vmem:[#allocation2 + $0x28] sm:$0xff] %vm82_vm0, %v549_v31  ;;  %1452 = vmatmul.msk.f32.vlgmr.msra.gmra.mxu1 %vm149_vm6, %v549_v31 }
 0xdd3   :  { %552 = vst.msk [vmem:[#allocation2 + $0x10] sm:$0xff] %vm216_vm7, %v549_v31  ;;  %v1971_v31 = vld [vmem:[%s2213_s6] sm:$0xff] }
 0xdd4   :  { %788 = vmatpush.msrb.mxu1 %v1971_v31  ;;  %855 = vmatpush.msrb.mxu2 %v1971_v31 }
 0xdd6   :  { %919 = vmatpush.msra.mxu1 %v1952_v23 }
 0xdd8   :  { %920 = vmatpush.msra.mxu1 %v1957_v25 }
 0xdda   :  { %v689_v29 = vld [vmem:[#allocation2 + $0x10] sm:$0xff]  ;;  %789 = vmatmul.f32.vlgmr.msrb.gmra.mxu1 %v1624_v10 }
 0xddb   :  { %921 = vmatpush.msra.mxu1 %v1964_v26 }
 0xddd   :  { %922 = vmatpush.msra.mxu1 %v1971_v31 }
 0xddf   :  { %1053 = vmatpush.msrb.mxu1 %v1952_v23 }
 0xde1   :  { %1054 = vmatpush.msrb.mxu1 %v1957_v25 }
 0xde3   :  { %1055 = vmatpush.msrb.mxu1 %v1964_v26 }
 0xde5   :  { %1056 = vmatpush.msrb.mxu1 %v1971_v31 }
 0xe4f   :  { %v573_v35 = vpop.f32.mrf.mxu1 }
 0xe50   :  { %v576_v37 = vadd.f32 %v573_v35, %v553_v38  ;;  %v691_v35 = vld [vmem:[#allocation2 + $0x20] sm:$0xff] }
 0xe52   :  { %1538 = vtanh.f32 %v576_v37  ;;  %v1453_v42 = vmul.f32 -1.442695, %v576_v37  ;;  %v692_v37 = vld [vmem:[#allocation2 + $0x28] sm:$0xff] }
 0xe54   :  { %1540 = vpow2.f32 %v1453_v42 }
 0xe58   :  { %v1539_v39 = vpop.eup %1538 }
 0xe59   :  { %599 = vrot.lane.b32.xlu0 %v1539_v39, %s1625_s0 }
 0xe5a   :  { %v1541_v43 = vpop.eup %1540 }
 0xe5b   :  { %v580_v45 = vadd.f32 1.0, %v1541_v43  ;;  %v1485_v43 = vld [vmem:[%s2211_s7] ss:$0 sm:$0xff] }
 0xe5d   :  { %1542 = vrcp.f32 %v580_v45  ;;  %v592_v51 = vand.u32 2147483648, %v580_v45  ;;  %vm586_vm3 = vweird.f32 %v580_v45  ;;  %v590_v52 = vand.u32 2147483647, %v580_v45 }
 0xe5f   :  { %v593_v36 = vor.u32 1.1754944e-38, %v592_v51  ;;  %vm591_vm5 = vcmp.eq.f32.partialorder %v590_v52, 8.507059e+37 }
 0xe63   :  { %v1543_v46 = vpop.eup %1542 }
 0xe64   :  { %v582_v47 = vmul.f32 %v1543_v46, %v580_v45  ;;  %vm587_vm2 = vweird.f32 %v1543_v46 }
 0xe65   :  { %vm588_vm4 = vmor %vm586_vm3, %vm587_vm2 }
 0xe66   :  { %v583_v48 = vsub.f32 1.0, %v582_v47 }
 0xe68   :  { %v584_v49 = vmul.f32 %v1543_v46, %v583_v48 }
 0xe6a   :  { %v585_v50 = vadd.f32 %v1543_v46, %v584_v49 }
 0xe6c   :  { %v589_v18 = vsel %vm588_vm4, %v1543_v46, %v585_v50 }
 0xe6d   :  { %v594_v53 = vsel %vm591_vm5, %v593_v36, %v589_v18 }
 0xe6e   :  { %v597_v55 = vmul.f32 %v594_v53, %v540_v22  ;;  %v690_v22 = vld [vmem:[#allocation2 + $0x18] sm:$0xff] }
 0xecb   :  { %v600_v38 = vpop.permute.xlu0 %599 }
 0xecc   :  { %v602_v54 = vmul.f32 %v600_v38, %v594_v53 }
 0xece   :  { %604 = vrot.lane.b32.xlu1 %v602_v54, %s1625_s0 }
 0xf40   :  { %v605_v56 = vpop.permute.xlu1 %604 }
 0xf41   :  { %v607_v57 = vadd.f32 %v605_v56, %v597_v55 }
 0xf43   :  { %1544 = vtanh.f32 %v607_v57 }
 0xf49   :  { %v1545_v58 = vpop.eup %1544 }
 0xf4a   :  { %610 = vrot.lane.b32.xlu2 %v1545_v58, %s1625_s0 }
 0xfa4   :  { %v611_v24 = vpop.permute.xlu2 %610 }
 0xfa5   :  { %v613_v28 = vmul.f32 %v611_v24, %v594_v53 }
 0xfa7   :  { %615 = vrot.lane.b32.xlu0 %v613_v28, %s1626_s4 }
0x1019   :  { %v616_v30 = vpop.permute.xlu0 %615 }
0x101a   :  { %618 = vst.msk [vmem:[#allocation2 + $0x30] sm:$0xff] %vm82_vm0, %v616_v30  ;;  %1454 = vmatmul.msk.f32.vlgmr.msra.gmra.mxu2 %vm149_vm6, %v616_v30 }
0x101b   :  { %619 = vst.msk [vmem:[#allocation2 + $0x8] sm:$0xff] %vm216_vm7, %v616_v30  ;;  %986 = vmatpush.msra.mxu2 %v1952_v23 }
0x101d   :  { %987 = vmatpush.msra.mxu2 %v1957_v25 }
0x101f   :  { %988 = vmatpush.msra.mxu2 %v1964_v26 }
0x1021   :  { %989 = vmatpush.msra.mxu2 %v1971_v31  ;;  %v693_v10 = vld [vmem:[#allocation2 + $0x30] sm:$0xff] }
0x1022   :  { %v688_v21 = vld [vmem:[#allocation2 + $0x8] sm:$0xff] }
0x109d   :  { %v640_v33 = vpop.f32.mrf.mxu2 }
0x109e   :  { %v643_v59 = vadd.f32 %v640_v33, %v620_v44 }
0x10a0   :  { %1546 = vtanh.f32 %v643_v59  ;;  %v1455_v61 = vmul.f32 -1.442695, %v643_v59  ;;  %v790_v59 = vpop.f32.mrf.mxu1 }
0x10a2   :  { %1548 = vpow2.f32 %v1455_v61 }
0x10a6   :  { %v1547_v60 = vpop.eup %1546 }
0x10a7   :  { %666 = vrot.lane.b32.xlu1 %v1547_v60, %s1625_s0 }
0x10a8   :  { %v1549_v62 = vpop.eup %1548 }
0x10a9   :  { %v647_v63 = vadd.f32 1.0, %v1549_v62 }
0x10ab   :  { %1550 = vrcp.f32 %v647_v63  ;;  %v659_v7 = vand.u32 2147483648, %v647_v63  ;;  %vm653_vm9 = vweird.f32 %v647_v63  ;;  %v657_v11 = vand.u32 2147483647, %v647_v63 }
0x10ad   :  { %v660_v41 = vor.u32 1.1754944e-38, %v659_v7  ;;  %vm658_vm11 = vcmp.eq.f32.partialorder %v657_v11, 8.507059e+37 }
0x10b1   :  { %v1551_v0 = vpop.eup %1550 }
0x10b2   :  { %v649_v1 = vmul.f32 %v1551_v0, %v647_v63  ;;  %vm654_vm8 = vweird.f32 %v1551_v0 }
0x10b3   :  { %vm655_vm10 = vmor %vm653_vm9, %vm654_vm8 }
0x10b4   :  { %v650_v2 = vsub.f32 1.0, %v649_v1 }
0x10b6   :  { %v651_v3 = vmul.f32 %v1551_v0, %v650_v2 }
0x10b8   :  { %v652_v4 = vadd.f32 %v1551_v0, %v651_v3 }
0x10ba   :  { %v656_v40 = vsel %vm655_vm10, %v1551_v0, %v652_v4 }
0x10bb   :  { %v661_v12 = vsel %vm658_vm11, %v660_v41, %v656_v40 }
0x10bc   :  { %v664_v14 = vmul.f32 %v661_v12, %v607_v57 }
0x1119   :  { %v667_v44 = vpop.permute.xlu1 %666 }
0x111a   :  { %v669_v13 = vmul.f32 %v667_v44, %v661_v12 }
0x111c   :  { %671 = vrot.lane.b32.xlu2 %v669_v13, %s1625_s0 }
0x1176   :  { %v672_v15 = vpop.permute.xlu2 %671 }
0x1177   :  { %v674_v16 = vadd.f32 %v672_v15, %v664_v14 }
0x1179   :  { %1552 = vtanh.f32 %v674_v16 }
0x117f   :  { %v1553_v17 = vpop.eup %1552 }
0x1180   :  { %677 = vrot.lane.b32.xlu0 %v1553_v17, %s1625_s0 }
0x11f2   :  { %v678_v5 = vpop.permute.xlu0 %677 }
0x11f3   :  { %v680_v19 = vmul.f32 %v678_v5, %v661_v12 }
0x11f5   :  { %682 = vrot.lane.b32.xlu1 %v680_v19, %s1626_s4 }
0x1267   :  { %v683_v8 = vpop.permute.xlu1 %682 }
0x1268   :  { %685 = vst.msk [vmem:[#allocation2 + $0x38] sm:$0xff] %vm82_vm0, %v683_v8 }
0x1269   :  { %686 = vst.msk [vmem:[#allocation2] sm:$0xff] %vm216_vm7, %v683_v8 }
0x126f   :  { %v694_v39 = vld [vmem:[#allocation2 + $0x38] sm:$0xff] }
0x1270   :  { %v687_v9 = vld [vmem:[#allocation2] sm:$0xff] }
0x1271   :  { %1456 = vmatmul.msk.f32.vlgmr.msrb.gmra.mxu3 %vm149_vm6, %v687_v9 }
0x1279   :  { %1457 = vmatmul.msk.f32.gmra.mxu3 %vm149_vm6, %v688_v21 }
0x1281   :  { %1458 = vmatmul.msk.f32.gmra.mxu3 %vm149_vm6, %v689_v29 }
0x1289   :  { %1459 = vmatmul.msk.f32.gmra.mxu3 %vm149_vm6, %v690_v22 }
0x1291   :  { %1460 = vmatmul.msk.f32.gmra.mxu3 %vm149_vm6, %v691_v35 }
0x1299   :  { %1461 = vmatmul.msk.f32.gmra.mxu3 %vm149_vm6, %v692_v37 }
0x12a1   :  { %1462 = vmatmul.msk.f32.gmra.mxu3 %vm149_vm6, %v693_v10 }
0x12a9   :  { %1463 = vmatmul.msk.f32.gmra.mxu3 %vm149_vm6, %v694_v39 }
0x12f4   :  { %v748_v42 = vpop.f32.mrf.mxu3 }
0x12f5   :  { %v2033_v30 = vadd.f32 %v1485_v43, %v748_v42 }
0x12fc   :  { %v751_v45 = vpop.f32.mrf.mxu3 }
0x12fd   :  { %v1997_v46 = vadd.f32 %v1485_v43, %v751_v45 }
0x1304   :  { %v754_v47 = vpop.f32.mrf.mxu3 }
0x1305   :  { %v1999_v48 = vadd.f32 %v1485_v43, %v754_v47 }
0x130c   :  { %v757_v49 = vpop.f32.mrf.mxu3 }
0x130d   :  { %v2001_v50 = vadd.f32 %v1485_v43, %v757_v49 }
0x1314   :  { %v760_v51 = vpop.f32.mrf.mxu3 }
0x1315   :  { %v2003_v52 = vadd.f32 %v1485_v43, %v760_v51 }
0x1317   :  { %v971_v18 = vsel %vm1798_vm1, %v2001_v50, %v2003_v52  ;;  %v1038_v36 = vsel %vm1798_vm1, %v2003_v52, %v2001_v50 }
0x131c   :  { %v763_v38 = vpop.f32.mrf.mxu3 }
0x131d   :  { %v2013_v53 = vadd.f32 %v1485_v43, %v763_v38 }
0x131f   :  { %v904_v54 = vsel %vm1798_vm1, %v1999_v48, %v2013_v53  ;;  %v1105_v55 = vsel %vm1798_vm1, %v2013_v53, %v1999_v48 }
0x1324   :  { %v766_v56 = vpop.f32.mrf.mxu3 }
0x1325   :  { %v2023_v57 = vadd.f32 %v1485_v43, %v766_v56 }
0x1327   :  { %v837_v58 = vsel %vm1798_vm1, %v1997_v46, %v2023_v57  ;;  %v1172_v24 = vsel %vm1798_vm1, %v2023_v57, %v1997_v46 }
0x132c   :  { %v769_v28 = vpop.f32.mrf.mxu3 }
0x132d   :  { %v2035_v33 = vadd.f32 %v1485_v43, %v769_v28 }
0x132f   :  { %v772_v60 = vsel %vm1798_vm1, %v2033_v30, %v2035_v33  ;;  %v1239_v61 = vsel %vm1798_vm1, %v2035_v33, %v2033_v30 }
0x1330   :  { %v793_v62 = vadd.f32 %v790_v59, %v772_v60 }
0x1332   :  { %1554 = vtanh.f32 %v793_v62  ;;  %v1464_v0 = vmul.f32 -1.442695, %v793_v62 }
0x1334   :  { %1556 = vpow2.f32 %v1464_v0 }
0x1338   :  { %v1555_v63 = vpop.eup %1554 }
0x1339   :  { %816 = vrot.lane.b32.xlu2 %v1555_v63, %s1625_s0 }
0x133a   :  { %v1557_v1 = vpop.eup %1556 }
0x133b   :  { %v797_v2 = vadd.f32 1.0, %v1557_v1 }
0x133d   :  { %1558 = vrcp.f32 %v797_v2  ;;  %v809_v41 = vand.u32 2147483648, %v797_v2  ;;  %vm803_vm13 = vweird.f32 %v797_v2  ;;  %v807_v44 = vand.u32 2147483647, %v797_v2 }
0x133f   :  { %v810_v13 = vor.u32 1.1754944e-38, %v809_v41  ;;  %vm808_vm15 = vcmp.eq.f32.partialorder %v807_v44, 8.507059e+37 }
0x1343   :  { %v1559_v3 = vpop.eup %1558 }
0x1344   :  { %v799_v4 = vmul.f32 %v1559_v3, %v797_v2  ;;  %vm804_vm12 = vweird.f32 %v1559_v3 }
0x1345   :  { %vm805_vm14 = vmor %vm803_vm13, %vm804_vm12 }
0x1346   :  { %v800_v7 = vsub.f32 1.0, %v799_v4 }
0x1348   :  { %v801_v11 = vmul.f32 %v1559_v3, %v800_v7 }
0x134a   :  { %v802_v40 = vadd.f32 %v1559_v3, %v801_v11 }
0x134c   :  { %v806_v12 = vsel %vm805_vm14, %v1559_v3, %v802_v40 }
0x134d   :  { %v811_v15 = vsel %vm808_vm15, %v810_v13, %v806_v12 }
0x134e   :  { %v814_v17 = vmul.f32 0.0, %v811_v15 }
0x1393   :  { %v817_v14 = vpop.permute.xlu2 %816 }
0x1394   :  { %v819_v16 = vmul.f32 %v817_v14, %v811_v15 }
0x1396   :  { %821 = vrot.lane.b32.xlu0 %v819_v16, %s1625_s0 }
0x1408   :  { %v822_v5 = vpop.permute.xlu0 %821 }
0x1409   :  { %v824_v19 = vadd.f32 %v822_v5, %v814_v17 }
0x140b   :  { %1560 = vtanh.f32 %v824_v19 }
0x1411   :  { %v1561_v6 = vpop.eup %1560 }
0x1412   :  { %827 = vrot.lane.b32.xlu1 %v1561_v6, %s1625_s0 }
0x1484   :  { %v828_v20 = vpop.permute.xlu1 %827 }
0x1485   :  { %v830_v32 = vmul.f32 %v828_v20, %v811_v15 }
0x1487   :  { %832 = vrot.lane.b32.xlu2 %v830_v32, %s1626_s4 }
0x14e1   :  { %v833_v34 = vpop.permute.xlu2 %832 }
0x14e2   :  { %835 = vst.msk [vmem:[#allocation3] sm:$0xff] %vm82_vm0, %v833_v34  ;;  %1465 = vmatmul.msk.f32.vlgmr.msrb.gmra.mxu2 %vm149_vm6, %v833_v34 }
0x14e3   :  { %836 = vst.msk [vmem:[#allocation3 + $0x38] sm:$0xff] %vm216_vm7, %v833_v34  ;;  %1120 = vmatpush.msrb.mxu2 %v1952_v23 }
0x14e5   :  { %1121 = vmatpush.msrb.mxu2 %v1957_v25 }
0x14e7   :  { %1122 = vmatpush.msrb.mxu2 %v1964_v26 }
0x14e9   :  { %1123 = vmatpush.msrb.mxu2 %v1971_v31 }
0x1565   :  { %v857_v8 = vpop.f32.mrf.mxu2 }
0x1566   :  { %v860_v9 = vadd.f32 %v857_v8, %v837_v58 }
0x1568   :  { %1562 = vtanh.f32 %v860_v9  ;;  %v1466_v29 = vmul.f32 -1.442695, %v860_v9 }
0x156a   :  { %1564 = vpow2.f32 %v1466_v29 }
0x156e   :  { %v1563_v21 = vpop.eup %1562 }
0x156f   :  { %883 = vrot.lane.b32.xlu0 %v1563_v21, %s1625_s0 }
0x1570   :  { %v1565_v22 = vpop.eup %1564 }
0x1571   :  { %v864_v35 = vadd.f32 1.0, %v1565_v22 }
0x1573   :  { %1566 = vrcp.f32 %v864_v35  ;;  %v876_v45 = vand.u32 2147483648, %v864_v35  ;;  %vm870_vm3 = vweird.f32 %v864_v35  ;;  %v874_v47 = vand.u32 2147483647, %v864_v35 }
0x1575   :  { %v877_v51 = vor.u32 1.1754944e-38, %v876_v45  ;;  %vm875_vm5 = vcmp.eq.f32.partialorder %v874_v47, 8.507059e+37 }
0x1579   :  { %v1567_v37 = vpop.eup %1566 }
0x157a   :  { %v866_v10 = vmul.f32 %v1567_v37, %v864_v35  ;;  %vm871_vm2 = vweird.f32 %v1567_v37 }
0x157b   :  { %vm872_vm4 = vmor %vm870_vm3, %vm871_vm2 }
0x157c   :  { %v867_v39 = vsub.f32 1.0, %v866_v10 }
0x157e   :  { %v868_v42 = vmul.f32 %v1567_v37, %v867_v39 }
0x1580   :  { %v869_v43 = vadd.f32 %v1567_v37, %v868_v42 }
0x1582   :  { %v873_v49 = vsel %vm872_vm4, %v1567_v37, %v869_v43 }
0x1583   :  { %v878_v56 = vsel %vm875_vm5, %v877_v51, %v873_v49 }
0x1584   :  { %v881_v28 = vmul.f32 %v878_v56, %v824_v19 }
0x15e1   :  { %v884_v38 = vpop.permute.xlu0 %883 }
0x15e2   :  { %v886_v58 = vmul.f32 %v884_v38, %v878_v56 }
0x15e4   :  { %888 = vrot.lane.b32.xlu1 %v886_v58, %s1625_s0 }
0x1656   :  { %v889_v59 = vpop.permute.xlu1 %888 }
0x1657   :  { %v891_v60 = vadd.f32 %v889_v59, %v881_v28 }
0x1659   :  { %1568 = vtanh.f32 %v891_v60 }
0x165f   :  { %v1569_v62 = vpop.eup %1568 }
0x1660   :  { %894 = vrot.lane.b32.xlu2 %v1569_v62, %s1625_s0 }
0x16ba   :  { %v895_v63 = vpop.permute.xlu2 %894 }
0x16bb   :  { %v897_v0 = vmul.f32 %v895_v63, %v878_v56 }
0x16bd   :  { %899 = vrot.lane.b32.xlu0 %v897_v0, %s1626_s4 }
0x172f   :  { %v900_v1 = vpop.permute.xlu0 %899 }
0x1730   :  { %902 = vst.msk [vmem:[#allocation3 + $0x8] sm:$0xff] %vm82_vm0, %v900_v1  ;;  %1467 = vmatmul.msk.f32.vlgmr.msra.gmra.mxu1 %vm149_vm6, %v900_v1 }
0x1731   :  { %903 = vst.msk [vmem:[#allocation3 + $0x30] sm:$0xff] %vm216_vm7, %v900_v1  ;;  %1187 = vmatpush.msra.mxu1 %v1952_v23 }
0x1733   :  { %1188 = vmatpush.msra.mxu1 %v1957_v25 }
0x1735   :  { %1189 = vmatpush.msra.mxu1 %v1964_v26 }
0x1737   :  { %1190 = vmatpush.msra.mxu1 %v1971_v31 }
0x17ad   :  { %v924_v2 = vpop.f32.mrf.mxu1 }
0x17ae   :  { %v927_v3 = vadd.f32 %v924_v2, %v904_v54 }
0x17b0   :  { %1570 = vtanh.f32 %v927_v3  ;;  %v1468_v7 = vmul.f32 -1.442695, %v927_v3 }
0x17b2   :  { %1572 = vpow2.f32 %v1468_v7 }
0x17b6   :  { %v1571_v4 = vpop.eup %1570 }
0x17b7   :  { %950 = vrot.lane.b32.xlu1 %v1571_v4, %s1625_s0 }
0x17b8   :  { %v1573_v11 = vpop.eup %1572 }
0x17b9   :  { %v931_v40 = vadd.f32 1.0, %v1573_v11 }
0x17bb   :  { %1574 = vrcp.f32 %v931_v40  ;;  %v943_v15 = vand.u32 2147483648, %v931_v40  ;;  %vm937_vm9 = vweird.f32 %v931_v40  ;;  %v941_v16 = vand.u32 2147483647, %v931_v40 }
0x17bd   :  { %v944_v17 = vor.u32 1.1754944e-38, %v943_v15  ;;  %vm942_vm11 = vcmp.eq.f32.partialorder %v941_v16, 8.507059e+37 }
0x17c1   :  { %v1575_v41 = vpop.eup %1574 }
0x17c2   :  { %v933_v44 = vmul.f32 %v1575_v41, %v931_v40  ;;  %vm938_vm8 = vweird.f32 %v1575_v41 }
0x17c3   :  { %vm939_vm10 = vmor %vm937_vm9, %vm938_vm8 }
0x17c4   :  { %v934_v12 = vsub.f32 1.0, %v933_v44 }
0x17c6   :  { %v935_v13 = vmul.f32 %v1575_v41, %v934_v12 }
0x17c8   :  { %v936_v14 = vadd.f32 %v1575_v41, %v935_v13 }
0x17ca   :  { %v940_v54 = vsel %vm939_vm10, %v1575_v41, %v936_v14 }
0x17cb   :  { %v945_v19 = vsel %vm942_vm11, %v944_v17, %v940_v54 }
0x17cc   :  { %v948_v20 = vmul.f32 %v945_v19, %v891_v60 }
0x1829   :  { %v951_v5 = vpop.permute.xlu1 %950 }
0x182a   :  { %v953_v6 = vmul.f32 %v951_v5, %v945_v19 }
0x182c   :  { %955 = vrot.lane.b32.xlu2 %v953_v6, %s1625_s0 }
0x1886   :  { %v956_v32 = vpop.permute.xlu2 %955 }
0x1887   :  { %v958_v34 = vadd.f32 %v956_v32, %v948_v20 }
0x1889   :  { %1576 = vtanh.f32 %v958_v34 }
0x188f   :  { %v1577_v8 = vpop.eup %1576 }
0x1890   :  { %961 = vrot.lane.b32.xlu0 %v1577_v8, %s1625_s0 }
0x1902   :  { %v962_v9 = vpop.permute.xlu0 %961 }
0x1903   :  { %v964_v21 = vmul.f32 %v962_v9, %v945_v19 }
0x1905   :  { %966 = vrot.lane.b32.xlu1 %v964_v21, %s1626_s4 }
0x1977   :  { %v967_v29 = vpop.permute.xlu1 %966 }
0x1978   :  { %969 = vst.msk [vmem:[#allocation3 + $0x10] sm:$0xff] %vm82_vm0, %v967_v29  ;;  %1469 = vmatmul.msk.f32.vlgmr.msra.gmra.mxu2 %vm149_vm6, %v967_v29 }
0x1979   :  { %970 = vst.msk [vmem:[#allocation3 + $0x28] sm:$0xff] %vm216_vm7, %v967_v29  ;;  %1254 = vmatpush.msra.mxu2 %v1952_v23 }
0x197b   :  { %1255 = vmatpush.msra.mxu2 %v1957_v25 }
0x197d   :  { %1256 = vmatpush.msra.mxu2 %v1964_v26 }
0x197f   :  { %1257 = vmatpush.msra.mxu2 %v1971_v31 }
0x19fb   :  { %v991_v22 = vpop.f32.mrf.mxu2 }
0x19fc   :  { %v994_v35 = vadd.f32 %v991_v22, %v971_v18 }
0x19fe   :  { %1578 = vtanh.f32 %v994_v35  ;;  %v1470_v10 = vmul.f32 -1.442695, %v994_v35 }
0x1a00   :  { %1580 = vpow2.f32 %v1470_v10 }
0x1a04   :  { %v1579_v37 = vpop.eup %1578 }
0x1a05   :  { %1017 = vrot.lane.b32.xlu2 %v1579_v37, %s1625_s0 }
0x1a06   :  { %v1581_v23 = vpop.eup %1580 }
0x1a07   :  { %v998_v39 = vadd.f32 1.0, %v1581_v23 }
0x1a09   :  { %1582 = vrcp.f32 %v998_v39  ;;  %v1010_v45 = vand.u32 2147483648, %v998_v39  ;;  %vm1004_vm13 = vweird.f32 %v998_v39  ;;  %v1008_v47 = vand.u32 2147483647, %v998_v39 }
0x1a0b   :  { %v1011_v49 = vor.u32 1.1754944e-38, %v1010_v45  ;;  %vm1009_vm15 = vcmp.eq.f32.partialorder %v1008_v47, 8.507059e+37 }
0x1a0f   :  { %v1583_v25 = vpop.eup %1582 }
0x1a10   :  { %v1000_v26 = vmul.f32 %v1583_v25, %v998_v39  ;;  %vm1005_vm12 = vweird.f32 %v1583_v25 }
0x1a11   :  { %vm1006_vm14 = vmor %vm1004_vm13, %vm1005_vm12 }
0x1a12   :  { %v1001_v42 = vsub.f32 1.0, %v1000_v26 }
0x1a14   :  { %v1002_v31 = vmul.f32 %v1583_v25, %v1001_v42 }
0x1a16   :  { %v1003_v43 = vadd.f32 %v1583_v25, %v1002_v31 }
0x1a18   :  { %v1007_v18 = vsel %vm1006_vm14, %v1583_v25, %v1003_v43 }
0x1a19   :  { %v1012_v38 = vsel %vm1009_vm15, %v1011_v49, %v1007_v18 }
0x1a1a   :  { %v1015_v58 = vmul.f32 %v1012_v38, %v958_v34 }
0x1a5f   :  { %v1018_v51 = vpop.permute.xlu2 %1017 }
0x1a60   :  { %v1020_v56 = vmul.f32 %v1018_v51, %v1012_v38 }
0x1a62   :  { %1022 = vrot.lane.b32.xlu0 %v1020_v56, %s1625_s0 }
0x1ad4   :  { %v1023_v28 = vpop.permute.xlu0 %1022 }
0x1ad5   :  { %v1025_v59 = vadd.f32 %v1023_v28, %v1015_v58 }
0x1ad7   :  { %1584 = vtanh.f32 %v1025_v59 }
0x1add   :  { %v1585_v60 = vpop.eup %1584 }
0x1ade   :  { %1028 = vrot.lane.b32.xlu1 %v1585_v60, %s1625_s0 }
0x1b50   :  { %v1029_v62 = vpop.permute.xlu1 %1028 }
0x1b51   :  { %v1031_v63 = vmul.f32 %v1029_v62, %v1012_v38 }
0x1b53   :  { %1033 = vrot.lane.b32.xlu2 %v1031_v63, %s1626_s4 }
0x1bad   :  { %v1034_v0 = vpop.permute.xlu2 %1033 }
0x1bae   :  { %1036 = vst.msk [vmem:[#allocation3 + $0x18] sm:$0xff] %vm82_vm0, %v1034_v0  ;;  %1471 = vmatmul.msk.f32.vlgmr.msrb.gmra.mxu1 %vm149_vm6, %v1034_v0 }
0x1baf   :  { %1037 = vst.msk [vmem:[#allocation3 + $0x20] sm:$0xff] %vm216_vm7, %v1034_v0 }
0x1c2b   :  { %v1058_v1 = vpop.f32.mrf.mxu1 }
0x1c2c   :  { %v1061_v2 = vadd.f32 %v1058_v1, %v1038_v36 }
0x1c2e   :  { %1586 = vtanh.f32 %v1061_v2  ;;  %v1472_v4 = vmul.f32 -1.442695, %v1061_v2 }
0x1c30   :  { %1588 = vpow2.f32 %v1472_v4 }
0x1c34   :  { %v1587_v3 = vpop.eup %1586 }
0x1c35   :  { %1084 = vrot.lane.b32.xlu0 %v1587_v3, %s1625_s0 }
0x1c36   :  { %v1589_v7 = vpop.eup %1588 }
0x1c37   :  { %v1065_v11 = vadd.f32 1.0, %v1589_v7 }
0x1c39   :  { %1590 = vrcp.f32 %v1065_v11  ;;  %v1077_v14 = vand.u32 2147483648, %v1065_v11  ;;  %vm1071_vm3 = vweird.f32 %v1065_v11  ;;  %v1075_v15 = vand.u32 2147483647, %v1065_v11 }
0x1c3b   :  { %v1078_v52 = vor.u32 1.1754944e-38, %v1077_v14  ;;  %vm1076_vm5 = vcmp.eq.f32.partialorder %v1075_v15, 8.507059e+37 }
0x1c3f   :  { %v1591_v40 = vpop.eup %1590 }
0x1c40   :  { %v1067_v41 = vmul.f32 %v1591_v40, %v1065_v11  ;;  %vm1072_vm2 = vweird.f32 %v1591_v40 }
0x1c41   :  { %vm1073_vm4 = vmor %vm1071_vm3, %vm1072_vm2 }
0x1c42   :  { %v1068_v44 = vsub.f32 1.0, %v1067_v41 }
0x1c44   :  { %v1069_v12 = vmul.f32 %v1591_v40, %v1068_v44 }
0x1c46   :  { %v1070_v13 = vadd.f32 %v1591_v40, %v1069_v12 }
0x1c48   :  { %v1074_v50 = vsel %vm1073_vm4, %v1591_v40, %v1070_v13 }
0x1c49   :  { %v1079_v16 = vsel %vm1076_vm5, %v1078_v52, %v1074_v50 }
0x1c4a   :  { %v1082_v17 = vmul.f32 %v1079_v16, %v1025_v59 }
0x1ca7   :  { %v1085_v36 = vpop.permute.xlu0 %1084 }
0x1ca8   :  { %v1087_v54 = vmul.f32 %v1085_v36, %v1079_v16 }
0x1caa   :  { %1089 = vrot.lane.b32.xlu1 %v1087_v54, %s1625_s0 }
0x1d1c   :  { %v1090_v5 = vpop.permute.xlu1 %1089 }
0x1d1d   :  { %v1092_v19 = vadd.f32 %v1090_v5, %v1082_v17 }
0x1d1f   :  { %1592 = vtanh.f32 %v1092_v19 }
0x1d25   :  { %v1593_v6 = vpop.eup %1592 }
0x1d26   :  { %1095 = vrot.lane.b32.xlu2 %v1593_v6, %s1625_s0 }
0x1d80   :  { %v1096_v20 = vpop.permute.xlu2 %1095 }
0x1d81   :  { %v1098_v32 = vmul.f32 %v1096_v20, %v1079_v16 }
0x1d83   :  { %1100 = vrot.lane.b32.xlu0 %v1098_v32, %s1626_s4 }
0x1df5   :  { %v1101_v34 = vpop.permute.xlu0 %1100 }
0x1df6   :  { %1103 = vst.msk [vmem:[#allocation3 + $0x20] sm:$0xff] %vm82_vm0, %v1101_v34  ;;  %1473 = vmatmul.msk.f32.vlgmr.msrb.gmra.mxu2 %vm149_vm6, %v1101_v34 }
0x1df7   :  { %1104 = vst.msk [vmem:[#allocation3 + $0x18] sm:$0xff] %vm216_vm7, %v1101_v34 }
0x1e79   :  { %v1125_v8 = vpop.f32.mrf.mxu2 }
0x1e7a   :  { %v1128_v9 = vadd.f32 %v1125_v8, %v1105_v55 }
0x1e7c   :  { %1594 = vtanh.f32 %v1128_v9  ;;  %v1474_v29 = vmul.f32 -1.442695, %v1128_v9 }
0x1e7e   :  { %1596 = vpow2.f32 %v1474_v29 }
0x1e82   :  { %v1595_v21 = vpop.eup %1594 }
0x1e83   :  { %1151 = vrot.lane.b32.xlu1 %v1595_v21, %s1625_s0 }
0x1e84   :  { %v1597_v22 = vpop.eup %1596 }
0x1e85   :  { %v1132_v35 = vadd.f32 1.0, %v1597_v22 }
0x1e87   :  { %1598 = vrcp.f32 %v1132_v35  ;;  %v1144_v26 = vand.u32 2147483648, %v1132_v35  ;;  %vm1138_vm9 = vweird.f32 %v1132_v35  ;;  %v1142_v42 = vand.u32 2147483647, %v1132_v35 }
0x1e89   :  { %v1145_v53 = vor.u32 1.1754944e-38, %v1144_v26  ;;  %vm1143_vm11 = vcmp.eq.f32.partialorder %v1142_v42, 8.507059e+37  ;;  %v1350_v26 = vld [vmem:[%s2215_s8 + $0x10] sm:$0xff]  ;;  %v1349_v42 = vld [vmem:[%s2215_s8 + $0x8] sm:$0xff] }
0x1e8d   :  { %v1599_v37 = vpop.eup %1598 }
0x1e8e   :  { %v1134_v10 = vmul.f32 %v1599_v37, %v1132_v35  ;;  %vm1139_vm8 = vweird.f32 %v1599_v37 }
0x1e8f   :  { %vm1140_vm10 = vmor %vm1138_vm9, %vm1139_vm8 }
0x1e90   :  { %v1135_v23 = vsub.f32 1.0, %v1134_v10 }
0x1e92   :  { %v1136_v39 = vmul.f32 %v1599_v37, %v1135_v23 }
0x1e94   :  { %v1137_v25 = vadd.f32 %v1599_v37, %v1136_v39 }
0x1e96   :  { %v1141_v48 = vsel %vm1140_vm10, %v1599_v37, %v1137_v25  ;;  %v1351_v25 = vld [vmem:[%s2215_s8 + $0x18] sm:$0xff] }
0x1e97   :  { %v1146_v31 = vsel %vm1143_vm11, %v1145_v53, %v1141_v48  ;;  %1371 = vmatpush.msrb.mxu1 %v1351_v25  ;;  %v1348_v48 = vld [vmem:[%s2215_s8] sm:$0xff] }
0x1e98   :  { %v1149_v45 = vmul.f32 %v1146_v31, %v1092_v19 }
0x1e99   :  { %1372 = vmatpush.msrb.mxu1 %v1350_v26 }
0x1e9b   :  { %1373 = vmatpush.msrb.mxu1 %v1349_v42 }
0x1e9d   :  { %1374 = vmatpush.msrb.mxu1 %v1348_v48 }
0x1ef5   :  { %v1152_v55 = vpop.permute.xlu1 %1151 }
0x1ef6   :  { %v1154_v43 = vmul.f32 %v1152_v55, %v1146_v31 }
0x1ef8   :  { %1156 = vrot.lane.b32.xlu2 %v1154_v43, %s1625_s0  ;;  %v1315_v43 = vld [vmem:[%s2216_s1 + $0x8] sm:$0xff] }
0x1f52   :  { %v1157_v47 = vpop.permute.xlu2 %1156 }
0x1f53   :  { %v1159_v18 = vadd.f32 %v1157_v47, %v1149_v45 }
0x1f55   :  { %1600 = vtanh.f32 %v1159_v18 }
0x1f5b   :  { %v1601_v49 = vpop.eup %1600 }
0x1f5c   :  { %1162 = vrot.lane.b32.xlu0 %v1601_v49, %s1625_s0 }
0x1fce   :  { %v1163_v51 = vpop.permute.xlu0 %1162 }
0x1fcf   :  { %v1165_v38 = vmul.f32 %v1163_v51, %v1146_v31  ;;  %v1314_v31 = vld [vmem:[%s2216_s1] sm:$0xff] }
0x1fd1   :  { %1167 = vrot.lane.b32.xlu1 %v1165_v38, %s1626_s4  ;;  %v1309_v38 = vld [vmem:[#allocation3 + $0x18] sm:$0xff] }
0x2043   :  { %v1168_v56 = vpop.permute.xlu1 %1167 }
0x2044   :  { %1170 = vst.msk [vmem:[#allocation3 + $0x28] sm:$0xff] %vm82_vm0, %v1168_v56  ;;  %1475 = vmatmul.msk.f32.vlgmr.msra.gmra.mxu1 %vm149_vm6, %v1168_v56 }
0x2045   :  { %1171 = vst.msk [vmem:[#allocation3 + $0x10] sm:$0xff] %vm216_vm7, %v1168_v56  ;;  %v1317_v56 = vld [vmem:[%s2216_s1 + $0x18] sm:$0xff] }
0x204c   :  { %v1308_v47 = vld [vmem:[#allocation3 + $0x10] sm:$0xff] }
0x20c1   :  { %v1192_v58 = vpop.f32.mrf.mxu1 }
0x20c2   :  { %v1195_v28 = vadd.f32 %v1192_v58, %v1172_v24 }
0x20c4   :  { %1602 = vtanh.f32 %v1195_v28  ;;  %v1476_v60 = vmul.f32 -1.442695, %v1195_v28 }
0x20c6   :  { %1604 = vpow2.f32 %v1476_v60  ;;  %v1318_v60 = vld [vmem:[%s2216_s1 + $0x20] sm:$0xff] }
0x20ca   :  { %v1603_v59 = vpop.eup %1602 }
0x20cb   :  { %1218 = vrot.lane.b32.xlu2 %v1603_v59, %s1625_s0  ;;  %v1310_v59 = vld [vmem:[#allocation3 + $0x20] sm:$0xff] }
0x20cc   :  { %v1605_v62 = vpop.eup %1604 }
0x20cd   :  { %v1199_v63 = vadd.f32 1.0, %v1605_v62  ;;  %v1325_v62 = vmul.f32 %v1317_v56, %v1309_v38 }
0x20cf   :  { %1606 = vrcp.f32 %v1199_v63  ;;  %v1211_v7 = vand.u32 2147483648, %v1199_v63  ;;  %vm1205_vm13 = vweird.f32 %v1199_v63  ;;  %v1209_v11 = vand.u32 2147483647, %v1199_v63 }
0x20d1   :  { %v1212_v57 = vor.u32 1.1754944e-38, %v1211_v7  ;;  %vm1210_vm15 = vcmp.eq.f32.partialorder %v1209_v11, 8.507059e+37  ;;  %v1320_v7 = vld [vmem:[%s2216_s1 + $0x30] sm:$0xff] }
0x20d5   :  { %v1607_v0 = vpop.eup %1606 }
0x20d6   :  { %v1201_v1 = vmul.f32 %v1607_v0, %v1199_v63  ;;  %vm1206_vm12 = vweird.f32 %v1607_v0 }
0x20d7   :  { %vm1207_vm14 = vmor %vm1205_vm13, %vm1206_vm12 }
0x20d8   :  { %v1202_v2 = vsub.f32 1.0, %v1201_v1  ;;  %v1319_v1 = vld [vmem:[%s2216_s1 + $0x28] sm:$0xff] }
0x20da   :  { %v1203_v3 = vmul.f32 %v1607_v0, %v1202_v2  ;;  %v1326_v2 = vmul.f32 %v1318_v60, %v1310_v59 }
0x20dc   :  { %v1204_v4 = vadd.f32 %v1607_v0, %v1203_v3 }
0x20de   :  { %v1208_v46 = vsel %vm1207_vm14, %v1607_v0, %v1204_v4  ;;  %v1311_v0 = vld [vmem:[#allocation3 + $0x28] sm:$0xff] }
0x20df   :  { %v1213_v40 = vsel %vm1210_vm15, %v1212_v57, %v1208_v46  ;;  %v1327_v11 = vmul.f32 %v1319_v1, %v1311_v0 }
0x20e0   :  { %v1216_v44 = vmul.f32 %v1213_v40, %v1159_v18  ;;  %v1316_v18 = vld [vmem:[%s2216_s1 + $0x10] sm:$0xff] }
0x20e1   :  { %v1324_v58 = vmul.f32 %v1316_v18, %v1308_v47 }
0x2125   :  { %v1219_v24 = vpop.permute.xlu2 %1218 }
0x2126   :  { %v1221_v41 = vmul.f32 %v1219_v24, %v1213_v40  ;;  %v1321_v24 = vld [vmem:[%s2216_s1 + $0x38] sm:$0xff] }
0x2128   :  { %1223 = vrot.lane.b32.xlu0 %v1221_v41, %s1625_s0 }
0x219a   :  { %v1224_v12 = vpop.permute.xlu0 %1223 }
0x219b   :  { %v1226_v13 = vadd.f32 %v1224_v12, %v1216_v44 }
0x219d   :  { %1608 = vtanh.f32 %v1226_v13 }
0x21a3   :  { %v1609_v14 = vpop.eup %1608 }
0x21a4   :  { %1229 = vrot.lane.b32.xlu1 %v1609_v14, %s1625_s0 }
0x2216   :  { %v1230_v15 = vpop.permute.xlu1 %1229 }
0x2217   :  { %v1232_v50 = vmul.f32 %v1230_v15, %v1213_v40 }
0x2219   :  { %1234 = vrot.lane.b32.xlu2 %v1232_v50, %s1626_s4 }
0x2273   :  { %v1235_v52 = vpop.permute.xlu2 %1234 }
0x2274   :  { %1237 = vst.msk [vmem:[#allocation3 + $0x30] sm:$0xff] %vm82_vm0, %v1235_v52  ;;  %1477 = vmatmul.msk.f32.vlgmr.msra.gmra.mxu2 %vm149_vm6, %v1235_v52 }
0x2275   :  { %1238 = vst.msk [vmem:[#allocation3 + $0x8] sm:$0xff] %vm216_vm7, %v1235_v52 }
0x227b   :  { %v1312_v4 = vld [vmem:[#allocation3 + $0x30] sm:$0xff] }
0x227c   :  { %v1307_v55 = vld [vmem:[#allocation3 + $0x8] sm:$0xff]  ;;  %v1328_v40 = vmul.f32 %v1320_v7, %v1312_v4 }
0x227d   :  { %v1323_v51 = vmul.f32 %v1315_v43, %v1307_v55 }
0x22f7   :  { %v1259_v36 = vpop.f32.mrf.mxu2 }
0x22f8   :  { %v1262_v16 = vadd.f32 %v1259_v36, %v1239_v61 }
0x22fa   :  { %1610 = vtanh.f32 %v1262_v16  ;;  %v1478_v17 = vmul.f32 -1.442695, %v1262_v16 }
0x22fc   :  { %1612 = vpow2.f32 %v1478_v17  ;;  %v1383_v17 = vld [vmem:[%s2218_s10 + $0x18] sm:$0xff] }
0x22fd   :  { %1403 = vmatpush.msrb.mxu2 %v1383_v17 }
0x2300   :  { %v1611_v54 = vpop.eup %1610 }
0x2301   :  { %1285 = vrot.lane.b32.xlu0 %v1611_v54, %s1625_s0 }
0x2302   :  { %v1613_v5 = vpop.eup %1612 }
0x2303   :  { %v1266_v19 = vadd.f32 1.0, %v1613_v5  ;;  %v1382_v5 = vld [vmem:[%s2218_s10 + $0x10] sm:$0xff] }
0x2304   :  { %1404 = vmatpush.msrb.mxu2 %v1382_v5 }
0x2305   :  { %1614 = vrcp.f32 %v1266_v19  ;;  %v1278_v27 = vand.u32 2147483648, %v1266_v19  ;;  %vm1272_vm3 = vweird.f32 %v1266_v19  ;;  %v1276_v9 = vand.u32 2147483647, %v1266_v19 }
0x2307   :  { %v1279_v33 = vor.u32 1.1754944e-38, %v1278_v27  ;;  %vm1277_vm4 = vcmp.eq.f32.partialorder %v1276_v9, 8.507059e+37  ;;  %v19_v27 = vstv %s2220_s13  ;;  %v1487_v9 = vld [vmem:[%s2217_s11] ss:$0 sm:$0xff] }
0x2308   :  { %20 = vst [vmem:[#allocation4] sm:$0x1] %v19_v27 }
0x230b   :  { %v1615_v6 = vpop.eup %1614 }
0x230c   :  { %v1268_v20 = vmul.f32 %v1615_v6, %v1266_v19  ;;  %vm1273_vm2 = vweird.f32 %v1615_v6  ;;  %v1381_v19 = vld [vmem:[%s2218_s10 + $0x8] sm:$0xff] }
0x230d   :  { %vm1274_vm1 = vmor %vm1272_vm3, %vm1273_vm2  ;;  %1405 = vmatpush.msrb.mxu2 %v1381_v19 }
0x230e   :  { %v1269_v32 = vsub.f32 1.0, %v1268_v20  ;;  %v1486_v20 = vld [vmem:[%s2214_s9] ss:$0 sm:$0xff] }
0x2310   :  { %v1270_v34 = vmul.f32 %v1615_v6, %v1269_v32 }
0x2312   :  { %v1271_v8 = vadd.f32 %v1615_v6, %v1270_v34 }
0x2314   :  { %v1275_v30 = vsel %vm1274_vm1, %v1615_v6, %v1271_v8  ;;  %v1380_v6 = vld [vmem:[%s2218_s10] sm:$0xff] }
0x2315   :  { %v1280_v21 = vsel %vm1277_vm4, %v1279_v33, %v1275_v30  ;;  %1406 = vmatpush.msrb.mxu2 %v1380_v6 }
0x2316   :  { %v1283_v22 = vmul.f32 %v1280_v21, %v1226_v13 }
0x2373   :  { %v1286_v61 = vpop.permute.xlu0 %1285 }
0x2374   :  { %v1288_v29 = vmul.f32 %v1286_v61, %v1280_v21  ;;  %v1488_v61 = vld [vmem:[%s2219_s12] ss:$0 sm:$0xff] }
0x2376   :  { %1290 = vrot.lane.b32.xlu1 %v1288_v29, %s1625_s0 }
0x23e8   :  { %v1291_v35 = vpop.permute.xlu1 %1290 }
0x23e9   :  { %v1293_v37 = vadd.f32 %v1291_v35, %v1283_v22  ;;  %v1489_v35 = vld [vmem:[#allocation4] ss:$0 sm:$0xff] }
0x23eb   :  { %1616 = vtanh.f32 %v1293_v37 }
0x23f1   :  { %v1617_v10 = vpop.eup %1616 }
0x23f2   :  { %1296 = vrot.lane.b32.xlu2 %v1617_v10, %s1625_s0 }
0x244c   :  { %v1297_v23 = vpop.permute.xlu2 %1296 }
0x244d   :  { %v1299_v39 = vmul.f32 %v1297_v23, %v1280_v21 }
0x244f   :  { %1301 = vrot.lane.b32.xlu0 %v1299_v39, %s1626_s4 }
0x24c1   :  { %v1302_v53 = vpop.permute.xlu0 %1301 }
0x24c2   :  { %1304 = vst.msk [vmem:[#allocation3 + $0x38] sm:$0xff] %vm82_vm0, %v1302_v53  ;;  %vm1417_vm0 = vcmask 123904  }
0x24c3   :  { %1305 = vst.msk [vmem:[#allocation3] sm:$0xff] %vm216_vm7, %v1302_v53 }
0x24c9   :  { %v1313_v57 = vld [vmem:[#allocation3 + $0x38] sm:$0xff] }
0x24ca   :  { %v1306_v45 = vld [vmem:[#allocation3] sm:$0xff]  ;;  %v1329_v44 = vmul.f32 %v1321_v24, %v1313_v57 }
0x24cb   :  { %v1322_v49 = vmul.f32 %v1314_v31, %v1306_v45 }
0x24cd   :  { %v1330_v28 = vadd.f32 %v1323_v51, %v1322_v49 }
0x24cf   :  { %v1331_v63 = vadd.f32 %v1330_v28, %v1324_v58 }
0x24d1   :  { %v1332_v3 = vadd.f32 %v1331_v63, %v1325_v62 }
0x24d3   :  { %v1333_v46 = vadd.f32 %v1332_v3, %v1326_v2 }
0x24d5   :  { %v1334_v41 = vadd.f32 %v1333_v46, %v1327_v11 }
0x24d7   :  { %v1335_v12 = vadd.f32 %v1334_v41, %v1328_v40 }
0x24d9   :  { %v1336_v13 = vadd.f32 %v1335_v12, %v1329_v44 }
0x24db   :  { %v1338_v14 = vrot.slane %v1336_v13, 2  ;;  %v1341_v50 = vrot.slane %v1336_v13, 4  ;;  %v1344_v36 = vrot.slane %v1336_v13, 6 }
0x24dd   :  { %v1340_v15 = vadd.f32 %v1338_v14, %v1336_v13 }
0x24df   :  { %v1343_v52 = vadd.f32 %v1341_v50, %v1340_v15 }
0x24e1   :  { %v1346_v16 = vadd.f32 %v1344_v36, %v1343_v52 }
0x24e3   :  { %v1347_v54 = vmul.f32 0.03125, %v1346_v16 }
0x24e5   :  { %1479 = vmatmul.msk.f32.vlgmr.msrb.gmra.mxu1 %vm149_vm6, %v1347_v54 }
0x2562   :  { %v1376_v32 = vpop.f32.mrf.mxu1 }
0x2563   :  { %v1377_v34 = vadd.f32 %v1486_v20, %v1376_v32 }
0x2565   :  { %1618 = vtanh.f32 %v1377_v34 }
0x256b   :  { %v1619_v8 = vpop.eup %1618 }
0x256c   :  { %1480 = vmatmul.msk.f32.vlgmr.msrb.gmra.mxu2 %vm149_vm6, %v1619_v8  ;;  %vm1427_vm6 = vcmask 1024  }
0x25ef   :  { %v1408_v30 = vpop.f32.mrf.mxu2 }
0x25f0   :  { %v1409_v33 = vadd.f32 %v1487_v9, %v1408_v30 }
0x25f2   :  { %1620 = vtanh.f32 %v1409_v33 }
0x25f8   :  { %v1621_v21 = vpop.eup %1620 }
0x25f9   :  { %v1416_v29 = vmul.f32 %v1621_v21, %v1488_v61 }
0x25fb   :  { %v1418_v22 = vsel %vm1417_vm0, %v1416_v29, 0.0 }
0x25fc   :  { %1419 = vadd.xlane.f32.xlu1 %v1418_v22 }
0x266f   :  { %v1420_v37 = vpop.xlane.xlu1 %1419 }
0x2670   :  { %v1425_v10 = vadd.f32 %v1489_v35, %v1420_v37 }
0x2672   :  { %1622 = vtanh.f32 %v1425_v10 }
0x2678   :  { %v1623_v23 = vpop.eup %1622 }
0x2679   :  { %1428 = vst.msk [vmem:[%s2221_s14] sm:$0x3] %vm1427_vm6, %v1623_v23 }

</bundles_post_ra>
